<compile_context>
chip_gen: v7x
topology: tpu7x:2x2x1
jax: 0.10.0
libtpu: 0.0.40
codegen_flags: <defaults>
</compile_context>

<pallas_src>
import functools
import math

import jax
import jax.numpy as jnp
from jax import lax
from jax.experimental import pallas as pl
from jax.experimental.pallas import tpu as pltpu

_LANES = 128
_SUBLANES = 8


def _round_up(x, m):
    return -(-x // m) * m


def _vmem_per_core_bytes():
    """Usable per-TensorCore VMEM for budgeting.

    v7x has 64 MiB per TensorCore and get_tpu_info() may report per-chip
    capacity (2 TCs), so clamp to 64 MiB.  On v5e/v6e (128 MiB/TC) the clamp is
    conservative but costs nothing: tile growth is capped by the MXU-M limit
    first except for extreme channel counts.
    """
    cap = 64 * 1024 * 1024
    try:
        info = pltpu.get_tpu_info()
        reported = int(getattr(info, "vmem_capacity_bytes", 0))
        if reported > 0:
            cap = reported
    except Exception:
        pass
    return min(cap, 64 * 1024 * 1024)


def _pick_row_tile(B, Ho, Wo_p, Wp_pad, Cp, Coutp, K, itemsize, budget_bytes):
    """Pick TH = output rows per grid step.

    TH is a multiple of lcm(8, K-1) so the flat (TH*Wo_p) output block stays
    sublane-aligned and the K-1-row halo BlockSpec lands exactly at (h+1)*TH.
    TH grows until the MXU M dim (TH*Wo_p) hits ~2048 or the live per-step VMEM
    would exceed the budget; the only clamp is keeping >=2 total grid steps so
    the auto-pipeline has something to overlap.
    """
    base = math.lcm(_SUBLANES, max(K - 1, 1))
    halo = max(K - 1, 1)

    def live_bytes(th):
        inp = 2 * (th + halo) * Wp_pad * Cp * itemsize      # dbl-buffered main+halo
        out = 2 * th * Wo_p * Coutp * itemsize              # dbl-buffered output
        wgt = 2 * (K * K * Cp + Cp * Coutp + Coutp) * 4     # dbl-buffered weights
        scratch = (th + K - 1) * Wp_pad * Cp * 4            # f32 input slab
        tmp = th * Wo_p * (Cp + Coutp) * 4                  # acc / matmul temporaries
        return inp + out + wgt + scratch + tmp

    ho_cap = _round_up(Ho, base)
    th = base
    while (th + base <= ho_cap and (th + base) * Wo_p <= 2048
           and live_bytes(th + base) <= budget_bytes):
        th += base
    if B < 2 and ho_cap >= 2 * base:                        # keep B*nH >= 2 steps
        th = min(th, (ho_cap // (2 * base)) * base)
    th = max(th, base)
    return th, live_bytes(th)


def _dsconv_kernel(*refs, TH, Wo, K, Cp, Coutp):
    # K > 1 refs: x(1,TH,Wp,Cp), halo(1,K-1,Wp,Cp), dw(K,K,Cp), pw(Cp,Coutp),
    #             pb(1,Coutp), o(1,TH*Wo,Coutp), xf scratch (TH+K-1,Wp,Cp) f32
    # K == 1    : same minus halo and scratch.
    if K > 1:
        x_ref, halo_ref, dw_ref, pw_ref, pb_ref, o_ref, xf_ref = refs
        # Pack main rows + halo rows once (cast included) into the f32 slab:
        # replaces the old concatenate + whole-slab astype VMEM copies.
        xf_ref[:TH] = x_ref[0].astype(jnp.float32)
        xf_ref[TH:] = halo_ref[0].astype(jnp.float32)

        # Depthwise conv on the VPU; K static column (sublane) shifts, row
        # shifts are cheap leading-dim slices.  Kept in f32 (v5e has no bf16
        # VALU and f32 matches the 1e-4 tolerance).
        acc = jnp.zeros((TH, Wo, Cp), jnp.float32)
        for dx in range(K):                            # static unroll, K small
            cols = xf_ref[:, dx:dx + Wo, :]            # (TH+K-1, Wo, Cp)
            for dy in range(K):
                acc = acc + cols[dy:dy + TH] * dw_ref[dy, dx, :]
    else:
        x_ref, dw_ref, pw_ref, pb_ref, o_ref = refs
        acc = x_ref[0, :, :Wo, :].astype(jnp.float32) * dw_ref[0, 0, :]

    # Fused pointwise 1x1 conv: one MXU matmul, batch*space folded into M.
    # Depthwise bias is pre-folded into pb in the wrapper.  pw_ref's dtype
    # selects f32 (exact) vs bf16 (MXU-native rate) inputs; accumulate in f32.
    flat = acc.reshape(TH * Wo, Cp).astype(pw_ref.dtype)   # layout no-op (Wo%8==0)
    out = jnp.dot(flat, pw_ref[...], preferred_element_type=jnp.float32)
    out = out + pb_ref[0]
    o_ref[0] = out.astype(o_ref.dtype)                 # lane-dense, unmasked store


def depthwise_separable_conv(x_nchw, dw, db, pw, pb, padding, *, mxu_dtype=None):
    """
    x_nchw : (B, Cin, H, W)      NCHW input (PyTorch convention)
    dw     : (Cin, 1, K, K)      depthwise Conv2d weight (groups=Cin)
    db     : (Cin,)              depthwise bias
    pw     : (Cout, Cin, 1, 1)   pointwise Conv2d weight
    pb     : (Cout,)             pointwise bias
    mxu_dtype: optional dtype (e.g. jnp.bfloat16) for the pointwise-matmul
               inputs; None keeps float32 (exact, matches 1e-4 tolerance).
    returns: (B, Cout, Ho, Wo)   NCHW, identical semantics to the nn.Module.
    """
    B, C, H, W = x_nchw.shape
    K = int(dw.shape[-1])
    Cout = int(pw.shape[0])
    Hp, Wp = H + 2 * padding, W + 2 * padding
    Ho, Wo = Hp - K + 1, Wp - K + 1
    if Ho < 1 or Wo < 1:
        raise ValueError("kernel larger than padded input")

    # Lane-dense channel padding (to 128) inflates HBM traffic / MXU width by
    # 128/C for tiny channel counts; this layout pays off for C, Cout >= ~64.
    # TODO(synk): add a W-in-lanes depthwise variant for very small C.
    Cp = _round_up(C, _LANES)
    Coutp = _round_up(Cout, _LANES)
    Wo_p = _round_up(Wo, _SUBLANES)      # sublane-aligned acc/reshape/store
    Wp_pad = Wo_p + K - 1
    itemsize = jnp.dtype(x_nchw.dtype).itemsize

    per_tc = _vmem_per_core_bytes()
    budget = int(per_tc * 0.35)          # <= ~22 MiB even on v7x's 64 MiB/TC
    TH, live_est = _pick_row_tile(B, Ho, Wo_p, Wp_pad, Cp, Coutp, K,
                                  itemsize, budget)
    assert K == 1 or TH % (K - 1) == 0
    nH = -(-Ho // TH)
    Ho_pad = nH * TH
    Hp_pad = Ho_pad + K - 1
    KH = max(K - 1, 1)

    # Layout glue: one fused pad (conv pad + row/col round-up + channel pad).
    x_nhwc = jnp.transpose(x_nchw, (0, 2, 3, 1))
    x_pad = jnp.pad(
        x_nhwc,
        ((0, 0),
         (padding, padding + (Ho_pad - Ho)),
         (padding, padding + (Wo_p - Wo)),
         (0, Cp - C)))                                            # (B,Hp_pad,Wp_pad,Cp)

    dw_k = jnp.pad(jnp.transpose(dw[:, 0, :, :], (1, 2, 0)),
                   ((0, 0), (0, 0), (0, Cp - C)))                 # (K,K,Cp)
    pw2d = pw[:, :, 0, 0]                                         # (Cout, Cin)
    pw_k = jnp.pad(jnp.transpose(pw2d, (1, 0)),
                   ((0, Cp - C), (0, Coutp - Cout)))              # (Cp,Coutp)
    if mxu_dtype is not None:
        pw_k = pw_k.astype(mxu_dtype)    # bf16 MXU inputs if requested
    # Fold depthwise bias into the pointwise bias (exact algebraically):
    #   (acc + db) @ W + pb == acc @ W + (db @ W + pb)
    pb_eff = pb.astype(jnp.float32) + jnp.sum(
        pw2d.astype(jnp.float32) * db.astype(jnp.float32)[None, :], axis=1)
    pb_k = jnp.pad(pb_eff, (0, Coutp - Cout)).reshape(1, Coutp)   # (1,Coutp)

    kernel = functools.partial(_dsconv_kernel, TH=TH, Wo=Wo_p, K=K,
                               Cp=Cp, Coutp=Coutp)

    in_specs = [pl.BlockSpec((1, TH, Wp_pad, Cp), lambda b, h: (b, h, 0, 0))]
    operands = [x_pad]
    scratch_shapes = []
    if K > 1:
        halo_step = TH // KH             # exact: TH is a multiple of K-1
        in_specs.append(
            pl.BlockSpec((1, KH, Wp_pad, Cp),
                         lambda b, h: (b, (h + 1) * halo_step, 0, 0)))
        operands.append(x_pad)
        scratch_shapes.append(pltpu.VMEM((TH + KH, Wp_pad, Cp), jnp.float32))
    # Grid-invariant weights/biases: DMA'd once, reused across all grid steps.
    # TODO(synk): pipeline_mode=pl.Buffered(1) here would single-buffer them
    # for very large channel counts on v7x.
    in_specs += [
        pl.BlockSpec((K, K, Cp), lambda b, h: (0, 0, 0)),
        pl.BlockSpec((Cp, Coutp), lambda b, h: (0, 0)),
        pl.BlockSpec((1, Coutp), lambda b, h: (0, 0)),
    ]
    operands += [dw_k, pw_k, pb_k]

    # Advisory cost numbers, now internally consistent (padded dims, block DMAs).
    flops = 2 * B * Ho_pad * Wo_p * Cp * (K * K + Coutp)
    bytes_accessed = (
        B * (Ho_pad + nH * (K - 1)) * Wp_pad * Cp * itemsize      # main + halo reads
        + B * Ho_pad * Wo_p * Coutp * itemsize                    # output writes
        + dw_k.size * 4 + pw_k.size * jnp.dtype(pw_k.dtype).itemsize
        + pb_k.size * 4)

    out_flat = pl.pallas_call(
        kernel,
        out_shape=jax.ShapeDtypeStruct((B, Ho_pad * Wo_p, Coutp), x_nchw.dtype),
        grid_spec=pltpu.PrefetchScalarGridSpec(
            num_scalar_prefetch=0,
            grid=(B, nH),
            in_specs=in_specs,
            out_specs=pl.BlockSpec((1, TH * Wo_p, Coutp), lambda b, h: (b, h, 0)),
            scratch_shapes=scratch_shapes),
        compiler_params=pltpu.CompilerParams(
            # both axes independent -> megacore/v7x cores can both get work
            dimension_semantics=("parallel", "parallel"),
            # <= 48 MiB keeps us inside v7x's 64 MiB per-TC physical VMEM
            vmem_limit_bytes=int(min(max(live_est + (16 << 20), 32 << 20),
                                     48 << 20))),
        cost_estimate=pl.CostEstimate(flops=flops, transcendentals=0,
                                      bytes_accessed=int(bytes_accessed)),
    )(*operands)

    out = out_flat.reshape(B, Ho_pad, Wo_p, Coutp)[:, :Ho, :Wo, :Cout]
    # NCHW for PyTorch parity; drop this transpose if the consumer accepts NHWC.
    return jnp.transpose(out, (0, 3, 1, 2))


def _reference(x_nchw, dw, db, pw, pb, padding):
    """Pure-JAX reference matching torch.nn.Conv2d semantics (NCHW)."""
    C = x_nchw.shape[1]
    depth = lax.conv_general_dilated(
        x_nchw, dw, window_strides=(1, 1),
        padding=[(padding, padding), (padding, padding)],
        dimension_numbers=("NCHW", "OIHW", "NCHW"),
        feature_group_count=C,
        precision=lax.Precision.HIGHEST) + db.reshape(1, -1, 1, 1)
    point = lax.conv_general_dilated(
        depth, pw, window_strides=(1, 1), padding="VALID",
        dimension_numbers=("NCHW", "OIHW", "NCHW"),
        precision=lax.Precision.HIGHEST) + pb.reshape(1, -1, 1, 1)
    return point


if __name__ == "__main__":
    key = jax.random.PRNGKey(0)
    B, Cin, Cout, H, W, K, PAD = 2, 4, 8, 16, 16, 3, 1

    k_x, k_dw, k_db, k_pw, k_pb = jax.random.split(key, 5)
    x = jax.random.normal(k_x, (B, Cin, H, W), jnp.float32)
    dw = jax.random.normal(k_dw, (Cin, 1, K, K), jnp.float32) * 0.1
    db = jax.random.normal(k_db, (Cin,), jnp.float32) * 0.1
    pw = jax.random.normal(k_pw, (Cout, Cin, 1, 1), jnp.float32) * 0.1
    pb = jax.random.normal(k_pb, (Cout,), jnp.float32) * 0.1

    ref = _reference(x, dw, db, pw, pb, PAD)

    # Exact (f32 MXU) path — matches the 1e-4 tolerance.
    conv = jax.jit(depthwise_separable_conv, static_argnums=(5,))
    out = jax.block_until_ready(conv(x, dw, db, pw, pb, PAD))
    assert out.shape == (B, Cout, H, W), out.shape
    max_err = float(jnp.max(jnp.abs(out - ref)))
    assert jnp.allclose(out, ref, atol=1e-4, rtol=1e-4), max_err

    # Fast (bf16 MXU inputs, f32 accumulate) path — recommended on v6e/v7x.
    conv_bf16 = jax.jit(
        functools.partial(depthwise_separable_conv, mxu_dtype=jnp.bfloat16),
        static_argnums=(5,))
    out_bf16 = jax.block_until_ready(conv_bf16(x, dw, db, pw, pb, PAD))
    max_err_bf16 = float(jnp.max(jnp.abs(out_bf16 - ref)))
    assert jnp.allclose(out_bf16, ref, atol=2e-2, rtol=2e-2), max_err_bf16

    print("KERNEL_OK")
</pallas_src>

<mosaic_0001>
module attributes {stable_mosaic.version = 11 : i64} {
  func.func @_dsconv_kernel(%arg0: i32, %arg1: i32, %arg2: memref<1x16x18x128xf32, #tpu.memory_space<vmem>>, %arg3: memref<1x2x18x128xf32, #tpu.memory_space<vmem>>, %arg4: memref<3x3x128xf32, #tpu.memory_space<vmem>>, %arg5: memref<128x128xf32, #tpu.memory_space<vmem>>, %arg6: memref<1x128xf32, #tpu.memory_space<vmem>>, %arg7: memref<1x256x128xf32, #tpu.memory_space<vmem>>, %arg8: memref<18x18x128xf32, #tpu.memory_space<vmem>>) attributes {dimension_semantics = [#tpu.dimension_semantics<parallel>, #tpu.dimension_semantics<parallel>], iteration_bounds = array<i64: 2, 1>, scalar_prefetch = 0 : i64, scratch_operands = 1 : i64, tpu.core_type = #tpu.core_type<tc>, window_params = [{transform_indices = @transform_0, window_bounds = array<i64: 1, 16, 18, 128>}, {transform_indices = @transform_1, window_bounds = array<i64: 1, 2, 18, 128>}, {pipeline_mode = #tpu.pipeline_mode<synchronous>, transform_indices = @transform_2, window_bounds = array<i64: 3, 3, 128>}, {pipeline_mode = #tpu.pipeline_mode<synchronous>, transform_indices = @transform_3, window_bounds = array<i64: 128, 128>}, {pipeline_mode = #tpu.pipeline_mode<synchronous>, transform_indices = @transform_4, window_bounds = array<i64: 1, 128>}, {transform_indices = @transform_5, window_bounds = array<i64: 1, 256, 128>}]} {
    %c0 = arith.constant 0 : index
    %c0_0 = arith.constant 0 : index
    %c0_1 = arith.constant 0 : index
    %c0_2 = arith.constant 0 : index
    %0 = vector.load %arg2[%c0, %c0_0, %c0_1, %c0_2] : memref<1x16x18x128xf32, #tpu.memory_space<vmem>>, vector<1x16x18x128xf32>
    %1 = vector.shape_cast %0 : vector<1x16x18x128xf32> to vector<16x18x128xf32>
    %c0_3 = arith.constant 0 : index
    %c0_4 = arith.constant 0 : index
    %c0_5 = arith.constant 0 : index
    %2 = vector.load %arg8[%c0_3, %c0_4, %c0_5] : memref<18x18x128xf32, #tpu.memory_space<vmem>>, vector<16x18x128xf32>
    tpu.vector_store %arg8[%c0_3, %c0_4, %c0_5], %1 {strides = array<i32>} : memref<18x18x128xf32, #tpu.memory_space<vmem>>, vector<16x18x128xf32>,
    %c0_6 = arith.constant 0 : index
    %c0_7 = arith.constant 0 : index
    %c0_8 = arith.constant 0 : index
    %c0_9 = arith.constant 0 : index
    %3 = vector.load %arg3[%c0_6, %c0_7, %c0_8, %c0_9] : memref<1x2x18x128xf32, #tpu.memory_space<vmem>>, vector<1x2x18x128xf32>
    %4 = vector.shape_cast %3 : vector<1x2x18x128xf32> to vector<2x18x128xf32>
    %c16 = arith.constant 16 : index
    %c0_10 = arith.constant 0 : index
    %c0_11 = arith.constant 0 : index
    %5 = vector.load %arg8[%c16, %c0_10, %c0_11] : memref<18x18x128xf32, #tpu.memory_space<vmem>>, vector<2x18x128xf32>
    tpu.vector_store %arg8[%c16, %c0_10, %c0_11], %4 {strides = array<i32>} : memref<18x18x128xf32, #tpu.memory_space<vmem>>, vector<2x18x128xf32>,
    %cst = arith.constant 0.000000e+00 : f32
    %6 = vector.broadcast %cst : f32 to vector<16x16x128xf32>
    %c0_12 = arith.constant 0 : index
    %c0_13 = arith.constant 0 : index
    %c0_14 = arith.constant 0 : index
    %7 = vector.load %arg8[%c0_12, %c0_13, %c0_14] : memref<18x18x128xf32, #tpu.memory_space<vmem>>, vector<18x16x128xf32>
    %8 = vector.extract_strided_slice %7 {offsets = [0, 0, 0], sizes = [16, 16, 128], strides = [1, 1, 1]} : vector<18x16x128xf32> to vector<16x16x128xf32>
    %c0_15 = arith.constant 0 : index
    %c0_16 = arith.constant 0 : index
    %c0_17 = arith.constant 0 : index
    %9 = vector.load %arg4[%c0_15, %c0_16, %c0_17] : memref<3x3x128xf32, #tpu.memory_space<vmem>>, vector<1x1x128xf32>
    %10 = vector.shape_cast %9 : vector<1x1x128xf32> to vector<128xf32>
    %11 = vector.shape_cast %10 : vector<128xf32> to vector<1x1x128xf32>
    %12 = vector.broadcast %11 : vector<1x1x128xf32> to vector<16x16x128xf32>
    %13 = arith.mulf %8, %12 : vector<16x16x128xf32>
    %14 = arith.addf %6, %13 : vector<16x16x128xf32>
    %15 = vector.extract_strided_slice %7 {offsets = [1, 0, 0], sizes = [16, 16, 128], strides = [1, 1, 1]} : vector<18x16x128xf32> to vector<16x16x128xf32>
    %c1 = arith.constant 1 : index
    %c0_18 = arith.constant 0 : index
    %c0_19 = arith.constant 0 : index
    %16 = vector.load %arg4[%c1, %c0_18, %c0_19] : memref<3x3x128xf32, #tpu.memory_space<vmem>>, vector<1x1x128xf32>
    %17 = vector.shape_cast %16 : vector<1x1x128xf32> to vector<128xf32>
    %18 = vector.shape_cast %17 : vector<128xf32> to vector<1x1x128xf32>
    %19 = vector.broadcast %18 : vector<1x1x128xf32> to vector<16x16x128xf32>
    %20 = arith.mulf %15, %19 : vector<16x16x128xf32>
    %21 = arith.addf %14, %20 : vector<16x16x128xf32>
    %22 = vector.extract_strided_slice %7 {offsets = [2, 0, 0], sizes = [16, 16, 128], strides = [1, 1, 1]} : vector<18x16x128xf32> to vector<16x16x128xf32>
    %c2 = arith.constant 2 : index
    %c0_20 = arith.constant 0 : index
    %c0_21 = arith.constant 0 : index
    %23 = vector.load %arg4[%c2, %c0_20, %c0_21] : memref<3x3x128xf32, #tpu.memory_space<vmem>>, vector<1x1x128xf32>
    %24 = vector.shape_cast %23 : vector<1x1x128xf32> to vector<128xf32>
    %25 = vector.shape_cast %24 : vector<128xf32> to vector<1x1x128xf32>
    %26 = vector.broadcast %25 : vector<1x1x128xf32> to vector<16x16x128xf32>
    %27 = arith.mulf %22, %26 : vector<16x16x128xf32>
    %28 = arith.addf %21, %27 : vector<16x16x128xf32>
    %c0_22 = arith.constant 0 : index
    %c1_23 = arith.constant 1 : index
    %c0_24 = arith.constant 0 : index
    %29 = vector.load %arg8[%c0_22, %c1_23, %c0_24] : memref<18x18x128xf32, #tpu.memory_space<vmem>>, vector<18x16x128xf32>
    %30 = vector.extract_strided_slice %29 {offsets = [0, 0, 0], sizes = [16, 16, 128], strides = [1, 1, 1]} : vector<18x16x128xf32> to vector<16x16x128xf32>
    %c0_25 = arith.constant 0 : index
    %c1_26 = arith.constant 1 : index
    %c0_27 = arith.constant 0 : index
    %31 = vector.load %arg4[%c0_25, %c1_26, %c0_27] : memref<3x3x128xf32, #tpu.memory_space<vmem>>, vector<1x1x128xf32>
    %32 = vector.shape_cast %31 : vector<1x1x128xf32> to vector<128xf32>
    %33 = vector.shape_cast %32 : vector<128xf32> to vector<1x1x128xf32>
    %34 = vector.broadcast %33 : vector<1x1x128xf32> to vector<16x16x128xf32>
    %35 = arith.mulf %30, %34 : vector<16x16x128xf32>
    %36 = arith.addf %28, %35 : vector<16x16x128xf32>
    %37 = vector.extract_strided_slice %29 {offsets = [1, 0, 0], sizes = [16, 16, 128], strides = [1, 1, 1]} : vector<18x16x128xf32> to vector<16x16x128xf32>
    %c1_28 = arith.constant 1 : index
    %c1_29 = arith.constant 1 : index
    %c0_30 = arith.constant 0 : index
    %38 = vector.load %arg4[%c1_28, %c1_29, %c0_30] : memref<3x3x128xf32, #tpu.memory_space<vmem>>, vector<1x1x128xf32>
    %39 = vector.shape_cast %38 : vector<1x1x128xf32> to vector<128xf32>
    %40 = vector.shape_cast %39 : vector<128xf32> to vector<1x1x128xf32>
    %41 = vector.broadcast %40 : vector<1x1x128xf32> to vector<16x16x128xf32>
    %42 = arith.mulf %37, %41 : vector<16x16x128xf32>
    %43 = arith.addf %36, %42 : vector<16x16x128xf32>
    %44 = vector.extract_strided_slice %29 {offsets = [2, 0, 0], sizes = [16, 16, 128], strides = [1, 1, 1]} : vector<18x16x128xf32> to vector<16x16x128xf32>
    %c2_31 = arith.constant 2 : index
    %c1_32 = arith.constant 1 : index
    %c0_33 = arith.constant 0 : index
    %45 = vector.load %arg4[%c2_31, %c1_32, %c0_33] : memref<3x3x128xf32, #tpu.memory_space<vmem>>, vector<1x1x128xf32>
    %46 = vector.shape_cast %45 : vector<1x1x128xf32> to vector<128xf32>
    %47 = vector.shape_cast %46 : vector<128xf32> to vector<1x1x128xf32>
    %48 = vector.broadcast %47 : vector<1x1x128xf32> to vector<16x16x128xf32>
    %49 = arith.mulf %44, %48 : vector<16x16x128xf32>
    %50 = arith.addf %43, %49 : vector<16x16x128xf32>
    %c0_34 = arith.constant 0 : index
    %c2_35 = arith.constant 2 : index
    %c0_36 = arith.constant 0 : index
    %51 = vector.load %arg8[%c0_34, %c2_35, %c0_36] : memref<18x18x128xf32, #tpu.memory_space<vmem>>, vector<18x16x128xf32>
    %52 = vector.extract_strided_slice %51 {offsets = [0, 0, 0], sizes = [16, 16, 128], strides = [1, 1, 1]} : vector<18x16x128xf32> to vector<16x16x128xf32>
    %c0_37 = arith.constant 0 : index
    %c2_38 = arith.constant 2 : index
    %c0_39 = arith.constant 0 : index
    %53 = vector.load %arg4[%c0_37, %c2_38, %c0_39] : memref<3x3x128xf32, #tpu.memory_space<vmem>>, vector<1x1x128xf32>
    %54 = vector.shape_cast %53 : vector<1x1x128xf32> to vector<128xf32>
    %55 = vector.shape_cast %54 : vector<128xf32> to vector<1x1x128xf32>
    %56 = vector.broadcast %55 : vector<1x1x128xf32> to vector<16x16x128xf32>
    %57 = arith.mulf %52, %56 : vector<16x16x128xf32>
    %58 = arith.addf %50, %57 : vector<16x16x128xf32>
    %59 = vector.extract_strided_slice %51 {offsets = [1, 0, 0], sizes = [16, 16, 128], strides = [1, 1, 1]} : vector<18x16x128xf32> to vector<16x16x128xf32>
    %c1_40 = arith.constant 1 : index
    %c2_41 = arith.constant 2 : index
    %c0_42 = arith.constant 0 : index
    %60 = vector.load %arg4[%c1_40, %c2_41, %c0_42] : memref<3x3x128xf32, #tpu.memory_space<vmem>>, vector<1x1x128xf32>
    %61 = vector.shape_cast %60 : vector<1x1x128xf32> to vector<128xf32>
    %62 = vector.shape_cast %61 : vector<128xf32> to vector<1x1x128xf32>
    %63 = vector.broadcast %62 : vector<1x1x128xf32> to vector<16x16x128xf32>
    %64 = arith.mulf %59, %63 : vector<16x16x128xf32>
    %65 = arith.addf %58, %64 : vector<16x16x128xf32>
    %66 = vector.extract_strided_slice %51 {offsets = [2, 0, 0], sizes = [16, 16, 128], strides = [1, 1, 1]} : vector<18x16x128xf32> to vector<16x16x128xf32>
    %c2_43 = arith.constant 2 : index
    %c2_44 = arith.constant 2 : index
    %c0_45 = arith.constant 0 : index
    %67 = vector.load %arg4[%c2_43, %c2_44, %c0_45] : memref<3x3x128xf32, #tpu.memory_space<vmem>>, vector<1x1x128xf32>
    %68 = vector.shape_cast %67 : vector<1x1x128xf32> to vector<128xf32>
    %69 = vector.shape_cast %68 : vector<128xf32> to vector<1x1x128xf32>
    %70 = vector.broadcast %69 : vector<1x1x128xf32> to vector<16x16x128xf32>
    %71 = arith.mulf %66, %70 : vector<16x16x128xf32>
    %72 = arith.addf %65, %71 : vector<16x16x128xf32>
    %73 = vector.shape_cast %72 : vector<16x16x128xf32> to vector<256x128xf32>
    %c0_46 = arith.constant 0 : index
    %c0_47 = arith.constant 0 : index
    %74 = vector.load %arg5[%c0_46, %c0_47] : memref<128x128xf32, #tpu.memory_space<vmem>>, vector<128x128xf32>
    %cst_48 = arith.constant dense<0.000000e+00> : vector<256x128xf32>
    %75 = tpu.matmul %73, %74, %cst_48 {dimension_numbers = #tpu.dot_dimension_numbers<[1], [0], [0], [1], [0, 0, 1, 1], [], []>} : vector<256x128xf32>, vector<128x128xf32>, vector<256x128xf32> -> vector<256x128xf32>
    %c0_49 = arith.constant 0 : index
    %c0_50 = arith.constant 0 : index
    %76 = vector.load %arg6[%c0_49, %c0_50] : memref<1x128xf32, #tpu.memory_space<vmem>>, vector<1x128xf32>
    %77 = vector.shape_cast %76 : vector<1x128xf32> to vector<128xf32>
    %78 = vector.shape_cast %77 : vector<128xf32> to vector<1x128xf32>
    %79 = vector.broadcast %78 : vector<1x128xf32> to vector<256x128xf32>
    %80 = arith.addf %75, %79 : vector<256x128xf32>
    %c0_51 = arith.constant 0 : index
    %c0_52 = arith.constant 0 : index
    %c0_53 = arith.constant 0 : index
    %81 = vector.load %arg7[%c0_51, %c0_52, %c0_53] : memref<1x256x128xf32, #tpu.memory_space<vmem>>, vector<1x256x128xf32>
    %82 = vector.shape_cast %81 : vector<1x256x128xf32> to vector<256x128xf32>
    %83 = vector.shape_cast %80 : vector<256x128xf32> to vector<1x256x128xf32>
    tpu.vector_store %arg7[%c0_51, %c0_52, %c0_53], %83 {strides = array<i32>} : memref<1x256x128xf32, #tpu.memory_space<vmem>>, vector<1x256x128xf32>,
    return
  }
  func.func @transform_0(%arg0: i32, %arg1: i32) -> (i32, i32, i32, i32) {
    %c0_i32 = arith.constant 0 : i32
    %c0_i32_0 = arith.constant 0 : i32
    %c0_i32_1 = arith.constant 0 : i32
    return %arg0, %arg1, %c0_i32, %c0_i32_0 : i32, i32, i32, i32
  }
  func.func @transform_1(%arg0: i32, %arg1: i32) -> (i32, i32, i32, i32) {
    %c1_i32 = arith.constant 1 : i32
    %0 = arith.addi %arg1, %c1_i32 : i32
    %c8_i32 = arith.constant 8 : i32
    %1 = arith.muli %0, %c8_i32 : i32
    %c0_i32 = arith.constant 0 : i32
    %c0_i32_0 = arith.constant 0 : i32
    %c0_i32_1 = arith.constant 0 : i32
    return %arg0, %1, %c0_i32, %c0_i32_0 : i32, i32, i32, i32
  }
  func.func @transform_2(%arg0: i32, %arg1: i32) -> (i32, i32, i32) {
    %c0_i32 = arith.constant 0 : i32
    %c0_i32_0 = arith.constant 0 : i32
    %c0_i32_1 = arith.constant 0 : i32
    %c0_i32_2 = arith.constant 0 : i32
    return %c0_i32, %c0_i32_0, %c0_i32_1 : i32, i32, i32
  }
  func.func @transform_3(%arg0: i32, %arg1: i32) -> (i32, i32) {
    %c0_i32 = arith.constant 0 : i32
    %c0_i32_0 = arith.constant 0 : i32
    %c0_i32_1 = arith.constant 0 : i32
    return %c0_i32, %c0_i32_0 : i32, i32
  }
  func.func @transform_4(%arg0: i32, %arg1: i32) -> (i32, i32) {
    %c0_i32 = arith.constant 0 : i32
    %c0_i32_0 = arith.constant 0 : i32
    %c0_i32_1 = arith.constant 0 : i32
    return %c0_i32, %c0_i32_0 : i32, i32
  }
  func.func @transform_5(%arg0: i32, %arg1: i32) -> (i32, i32, i32) {
    %c0_i32 = arith.constant 0 : i32
    %c0_i32_0 = arith.constant 0 : i32
    return %arg0, %arg1, %c0_i32 : i32, i32, i32
  }
}

</mosaic_0001>

<bundles_post_ra>
// kernel: depthwise_separable_conv.1
= control target key start
LH: loop header
LB: loop body
LE: loop exit
PB: predicated region body
PF: predicated region fallthrough
CT: control target
= control target key end

     0   :  { %s1884_s18 = smov 0   ;;  %s1886_s19 = smov 0   ;;  %s3035_s0 = inlined_call_operand.vmem [shape: f32[2,18,18,128], index: 0, kind: input, shape index: {}, may-alias: {0,1}]   ;;  %s3036_s1 = inlined_call_operand.vmem [shape: f32[2,18,18,128], index: 1, kind: input, shape index: {}, may-alias: {0,1}]   ;;  %s3037_s2 = inlined_call_operand.vmem [shape: f32[3,3,128], index: 2, kind: input, shape index: {}]   ;;  %s3038_s3 = inlined_call_operand.vmem [shape: f32[128,128], index: 3, kind: input, shape index: {}]   ;;  %s3039_s4 = inlined_call_operand.vmem [shape: f32[1,128], index: 4, kind: input, shape index: {}]   ;;  %s3040_s5 = inlined_call_operand.vmem [shape: f32[2,256,128], index: 5, kind: output, shape index: {}]  }
   0x1   :  { %s1888_s20 = smov 0  }
   0x2 LB: > { %s27_s21 = sadd.s32 1, %s1848_s19  ;;  %p1580_p0 = scmp.ge.s32.totalorder %s1852_s20, 1  ;;  %s1852_s20 = sphi %s1888_s20, %s15_s20   ;;  %s1848_s19 = sphi %s1886_s19, %s3115_s19   ;;  %s1844_s18 = sphi %s1884_s18, %s3114_s18  }
   0x3   : > { %p29_p1 = scmp.ge.s32.totalorder %s27_s21, 2  ;;  %p245_p2 = scmp.lt.s32.totalorder %s1852_s20, 3 }
   0x5   : > { %s3117_s21 = smov (%p29_p1, %s27_s21), 0  ;;  %p246_p3 = pnand %p1580_p0, %p245_p2 }
   0x7   : > { %249 = sbr.rel (%p246_p3) target bundleno = 396 (0x18c), region = 40 }
   0xe   : > { %v1185_v0 = vld [vmem:[%s3038_s3] sm:$0xff]  ;;  %v1186_v1 = vld [vmem:[%s3038_s3 + $0x8] sm:$0xff]  ;;  %v1187_v2 = vld [vmem:[%s3038_s3 + $0x10] sm:$0xff]  ;;  %p305_p4 = scmp.lt.s32.totalorder %s1844_s18, 1 }
   0xf   : > { %v1734_v3 = vpack.c.bf16 %v1186_v1, %v1185_v0  ;;  %v1188_v4 = vld [vmem:[%s3038_s3 + $0x18] sm:$0xff]  ;;  %v1189_v6 = vld [vmem:[%s3038_s3 + $0x20] sm:$0xff]  ;;  %v1190_v7 = vld [vmem:[%s3038_s3 + $0x28] sm:$0xff] }
  0x10   : > { %v1738_v5 = vpack.c.bf16 %v1188_v4, %v1187_v2  ;;  %s3119_s18 = smov (!%p305_p4, %s1844_s18), 1  ;;  %v1191_v8 = vld [vmem:[%s3038_s3 + $0x30] sm:$0xff]  ;;  %v1192_v9 = vld [vmem:[%s3038_s3 + $0x38] sm:$0xff]  ;;  %v1193_v10 = vld [vmem:[%s3038_s3 + $0x40] sm:$0xff]  ;;  %v1742_v11 = vpack.c.bf16 %v1190_v7, %v1189_v6 }
  0x11   : > { %1735 = vmatprep.subr.bf16.mxu0 %v1734_v3  ;;  %1766 = vmatprep.subr.bf16.mxu1 %v1734_v3  ;;  %s1782_s15 = smul.u32 432, %s3119_s18  ;;  %v1194_v12 = vld [vmem:[%s3038_s3 + $0x48] sm:$0xff]  ;;  %v1938_v13 = vld [vmem:[%s3037_s2] ss:$0 sm:$0xff]  ;;  %v1943_v14 = vld [vmem:[%s3037_s2 + $0x4] ss:$0 sm:$0xff]  ;;  %v1978_v25 = vpack.c.bf16 %v1192_v9, %v1191_v8 }
  0x12   : > { %1737 = vmatpush3.bf16.msra.mxu0 %v1734_v3  ;;  %1774 = vmatpush3.bf16.msra.mxu1 %v1734_v3  ;;  %v1195_v15 = vld [vmem:[%s3038_s3 + $0x50] sm:$0xff]  ;;  %v1196_v16 = vld [vmem:[%s3038_s3 + $0x58] sm:$0xff]  ;;  %v1197_v17 = vld [vmem:[%s3038_s3 + $0x60] sm:$0xff]  ;;  %v1989_v31 = vpack.c.bf16 %v1194_v12, %v1193_v10 }
  0x13   : > { %1739 = vmatprep.subr.bf16.mxu0 %v1738_v5  ;;  %1767 = vmatprep.subr.bf16.mxu1 %v1738_v5  ;;  %v1198_v18 = vld [vmem:[%s3038_s3 + $0x68] sm:$0xff]  ;;  %v1199_v19 = vld [vmem:[%s3038_s3 + $0x70] sm:$0xff]  ;;  %v1200_v20 = vld [vmem:[%s3038_s3 + $0x78] sm:$0xff]  ;;  %s1968_s16 = scalar_lea.vmem %s3035_s0, %s1782_s15  ;;  %v2001_v40 = vpack.c.bf16 %v1196_v16, %v1195_v15  ;;  %s2240_s10 = sadd.s32 384, %s1782_s15 }
  0x14   : > { %v1973_v21 = vld [vmem:[%s3037_s2 + $0x8] ss:$0 sm:$0xff]  ;;  %v345_v22 = vld [vmem:[%s1968_s16] sm:$0xff]  ;;  %v348_v24 = vld [vmem:[%s1968_s16 + $0x18] sm:$0xff]  ;;  %v2003_v41 = vpack.c.bf16 %v1198_v18, %v1197_v17  ;;  %v2005_v42 = vpack.c.bf16 %v1200_v20, %v1199_v19  ;;  %s2293_s12 = scalar_lea.vmem %s3036_s1, %s2240_s10  ;;  %s1605_s15 = sshll.u32 %s3119_s18, 8 }
  0x15   : > { %v346_v23 = vld [vmem:[%s1968_s16 + $0x8] sm:$0xff]  ;;  %v1981_v26 = vld [vmem:[%s1968_s16 + $0x20] sm:$0xff]  ;;  %v351_v27 = vld [vmem:[%s1968_s16 + $0x30] sm:$0xff]  ;;  %393 = vst [vmem:[#allocation2] sm:$0xff] %v345_v22  ;;  %v495_v29 = vmul.f32 %v1938_v13, %v345_v22  ;;  %v565_v30 = vmul.f32 %v1943_v14, %v348_v24  ;;  %v497_v32 = vmul.f32 %v1938_v13, %v348_v24 }
  0x16   : > { %1741 = vmatpush3.bf16.msra.mxu0 %v1738_v5  ;;  %1775 = vmatpush3.bf16.msra.mxu1 %v1738_v5  ;;  %v1985_v28 = vld [vmem:[%s1968_s16 + $0x38] sm:$0xff]  ;;  %394 = vst [vmem:[#allocation2 + $0x8] sm:$0xff] %v346_v23  ;;  %396 = vst [vmem:[#allocation2 + $0x18] sm:$0xff] %v348_v24  ;;  %v567_v33 = vmul.f32 %v1943_v14, %v351_v27  ;;  %v635_v35 = vmul.f32 %v1973_v21, %v351_v27  ;;  %v369_v36 = vld [vmem:[%s1968_s16 + $0xc0] sm:$0xff] }
  0x17   : > { %3072 = vst [vmem:[#allocation3_spill] sm:$0xff] %v1985_v28  ;;  %1743 = vmatprep.subr.bf16.mxu0 %v1742_v11  ;;  %1768 = vmatprep.subr.bf16.mxu1 %v1742_v11  ;;  %397 = vst [vmem:[#allocation2 + $0x20] sm:$0xff] %v1981_v26  ;;  %v597_v34 = vadd.f32 %v565_v30, %v495_v29  ;;  %v370_v37 = vld [vmem:[%s1968_s16 + $0xc8] sm:$0xff]  ;;  %v496_v38 = vmul.f32 %v1938_v13, %v346_v23  ;;  %v2010_v43 = vld [vmem:[%s3037_s2 + $0x1] ss:$0 sm:$0xff] }
  0x18   : > { %399 = vst [vmem:[#allocation2 + $0x30] sm:$0xff] %v351_v27  ;;  %400 = vst [vmem:[#allocation2 + $0x38] sm:$0xff] %v1985_v28  ;;  %v566_v39 = vmul.f32 %v1943_v14, %v1981_v26  ;;  %v372_v44 = vld [vmem:[%s1968_s16 + $0xd8] sm:$0xff]  ;;  %v2014_v45 = vld [vmem:[%s1968_s16 + $0xe0] sm:$0xff]  ;;  %v511_v47 = vmul.f32 %v1938_v13, %v369_v36  ;;  %v2019_v48 = vmul.f32 %v1938_v13, %v351_v27 }
  0x19   : > { %v375_v46 = vld [vmem:[%s1968_s16 + $0xf0] sm:$0xff]  ;;  %417 = vst [vmem:[#allocation2 + $0xc0] sm:$0xff] %v369_v36  ;;  %418 = vst [vmem:[#allocation2 + $0xc8] sm:$0xff] %v370_v37  ;;  %v2024_v49 = vld [vmem:[%s3037_s2 + $0x5] ss:$0 sm:$0xff]  ;;  %v581_v51 = vmul.f32 %v1943_v14, %v372_v44  ;;  %v636_v54 = vmul.f32 %v1973_v21, %v1985_v28  ;;  %v2047_v60 = vmul.f32 %v1938_v13, %v370_v37 }
  0x1a   : > { %1745 = vmatpush3.bf16.msra.mxu0 %v1742_v11  ;;  %1776 = vmatpush3.bf16.msra.mxu1 %v1742_v11  ;;  %v2027_v50 = vld [vmem:[%s1968_s16 + $0xf8] sm:$0xff]  ;;  %420 = vst [vmem:[#allocation2 + $0xd8] sm:$0xff] %v372_v44  ;;  %421 = vst [vmem:[#allocation2 + $0xe0] sm:$0xff] %v2014_v45  ;;  %v347_v52 = vld [vmem:[%s1968_s16 + $0x10] sm:$0x3]  ;;  %v598_v57 = vadd.f32 %v566_v39, %v496_v38  ;;  %v2049_v61 = vadd.f32 %v567_v33, %v497_v32 }
  0x1b   : > { %423 = vst [vmem:[#allocation2 + $0xf0] sm:$0xff] %v375_v46  ;;  %v350_v53 = vld [vmem:[%s1968_s16 + $0x28] sm:$0x3]  ;;  %1747 = vmatprep.subr.bf16.mxu0 %v1978_v25  ;;  %1769 = vmatprep.subr.bf16.mxu1 %v1978_v25  ;;  %424 = vst [vmem:[#allocation2 + $0xf8] sm:$0xff] %v2027_v50  ;;  %v353_v56 = vld [vmem:[%s1968_s16 + $0x40] sm:$0x3]  ;;  %v667_v62 = vadd.f32 %v635_v35, %v597_v34  ;;  %v613_v63 = vadd.f32 %v581_v51, %v511_v47 }
  0x1c   : > { %v2040_v55 = vld [vmem:[%s3037_s2 + $0x9] ss:$0 sm:$0xff]  ;;  %395 = vst [vmem:[#allocation2 + $0x10] sm:$0x3] %v347_v52  ;;  %398 = vst [vmem:[#allocation2 + $0x28] sm:$0x3] %v350_v53  ;;  %v651_v0 = vmul.f32 %v1973_v21, %v375_v46  ;;  %v2061_v4 = vmul.f32 %v1938_v13, %v1981_v26  ;;  %v2069_v7 = vmul.f32 %v1938_v13, %v375_v46 }
  0x1d   : > { %v371_v58 = vld [vmem:[%s1968_s16 + $0xd0] sm:$0x3]  ;;  %v374_v59 = vld [vmem:[%s1968_s16 + $0xe8] sm:$0x3]  ;;  %401 = vst [vmem:[#allocation2 + $0x40] sm:$0x3] %v353_v56  ;;  %v2072_v8 = vmul.f32 %v1943_v14, %v375_v46  ;;  %v2076_v9 = vmul.f32 %v1943_v14, %v2014_v45  ;;  %v2080_v10 = vmul.f32 %v1973_v21, %v2027_v50  ;;  %v2090_v18 = vadd.f32 %v636_v54, %v598_v57 }
  0x1e   : > { %v377_v1 = vld [vmem:[%s1968_s16 + $0x100] sm:$0x3]  ;;  %419 = vst [vmem:[#allocation2 + $0xd0] sm:$0x3] %v371_v58  ;;  %422 = vst [vmem:[#allocation2 + $0xe8] sm:$0x3] %v374_v59  ;;  %1749 = vmatpush3.bf16.msra.mxu0 %v1978_v25  ;;  %1777 = vmatpush3.bf16.msra.mxu1 %v1978_v25  ;;  %v2094_v19 = vmul.f32 %v1938_v13, %v372_v44  ;;  %v2114_v26 = vmul.f32 %v1943_v14, %v1985_v28 }
  0x1f   : > { %v2054_v2 = vld [vmem:[%s1968_s16 + $0x48] sm:$0xff]  ;;  %v2057_v3 = vld [vmem:[%s1968_s16 + $0x50] sm:$0xff]  ;;  %v2066_v6 = vld [vmem:[%s3037_s2 + $0x2] ss:$0 sm:$0xff]  ;;  %3074 = vst [vmem:[#allocation5_spill] sm:$0xff] %v2069_v7  ;;  %1751 = vmatprep.subr.bf16.mxu0 %v1989_v31  ;;  %1770 = vmatprep.subr.bf16.mxu1 %v1989_v31  ;;  %v683_v32 = vadd.f32 %v651_v0, %v613_v63 }
  0x20   : > { %3073 = vst [vmem:[#allocation4_spill] sm:$0xff] %v2057_v3  ;;  %v699_v5 = vld [vmem:[#allocation2 + $0x1] sm:$0xff]  ;;  %425 = vst [vmem:[#allocation2 + $0x100] sm:$0x3] %v377_v1  ;;  %v701_v12 = vld [vmem:[#allocation2 + $0x19] sm:$0xff]  ;;  %v2106_v23 = vmul.f32 %v1973_v21, %v2054_v2  ;;  %v2120_v34 = vmul.f32 %v1973_v21, %v2057_v3 }
  0x21   : > { %402 = vst [vmem:[#allocation2 + $0x48] sm:$0xff] %v2054_v2  ;;  %403 = vst [vmem:[#allocation2 + $0x50] sm:$0xff] %v2057_v3  ;;  %v2085_v11 = vld [vmem:[%s1968_s16 + $0x108] sm:$0xff]  ;;  %v703_v15 = vld [vmem:[#allocation2 + $0x31] sm:$0xff]  ;;  %v740_v16 = vmul.f32 %v2010_v43, %v699_v5  ;;  %v809_v20 = vmul.f32 %v2024_v49, %v701_v12  ;;  %v2124_v36 = vmul.f32 %v2010_v43, %v701_v12 }
  0x22   : > { %v942_v17 = vld [vmem:[#allocation2 + $0x2] sm:$0xff]  ;;  %426 = vst [vmem:[#allocation2 + $0x108] sm:$0xff] %v2085_v11  ;;  %v2109_v24 = vld [vmem:[%s1968_s16 + $0x110] sm:$0xff]  ;;  %v356_v25 = vld [vmem:[%s1968_s16 + $0x58] sm:$0x3]  ;;  %v878_v29 = vmul.f32 %v2040_v55, %v703_v15  ;;  %v2127_v37 = vmul.f32 %v2010_v43, %v703_v15  ;;  %v2130_v38 = vmul.f32 %v2024_v49, %v703_v15  ;;  %1753 = vmatpush3.bf16.msra.mxu0 %v1989_v31 }
  0x23   : > { %v2102_v22 = vld [vmem:[%s3037_s2 + $0x6] ss:$0 sm:$0xff]  ;;  %v772_v27 = vadd.f32 %v740_v16, %v667_v62  ;;  %v944_v30 = vld [vmem:[#allocation2 + $0x1a] sm:$0xff]  ;;  %427 = vst [vmem:[#allocation2 + $0x110] sm:$0xff] %v2109_v24  ;;  %404 = vst [vmem:[#allocation2 + $0x58] sm:$0x3] %v356_v25  ;;  %v983_v39 = vmul.f32 %v2066_v6, %v942_v17  ;;  %1778 = vmatpush3.bf16.msra.mxu1 %v1989_v31  ;;  %1755 = vmatprep.subr.bf16.mxu0 %v2001_v40 }
  0x24   : > { %v715_v33 = vld [vmem:[#allocation2 + $0xc1] sm:$0xff]  ;;  %v380_v35 = vld [vmem:[%s1968_s16 + $0x118] sm:$0x3]  ;;  %3075 = vst [vmem:[#allocation6_spill] sm:$0xff] %v2127_v37  ;;  %v2139_v52 = vmul.f32 %v2066_v6, %v944_v30  ;;  %v2144_v53 = vld [vmem:[%s3037_s2 + $0xa] ss:$0 sm:$0xff]  ;;  %1771 = vmatprep.subr.bf16.mxu1 %v2001_v40  ;;  %v1052_v57 = vmul.f32 %v2102_v22, %v944_v30 }
  0x25   : > { %v717_v44 = vld [vmem:[#allocation2 + $0xd9] sm:$0xff]  ;;  %428 = vst [vmem:[#allocation2 + $0x118] sm:$0x3] %v380_v35  ;;  %v841_v47 = vadd.f32 %v809_v20, %v772_v27  ;;  %v719_v54 = vld [vmem:[#allocation2 + $0xf1] sm:$0xff]  ;;  %v756_v56 = vmul.f32 %v2010_v43, %v715_v33  ;;  %v958_v59 = vld [vmem:[#allocation2 + $0xc2] sm:$0xff] }
  0x26   : > { %v2134_v46 = vld [vmem:[%s1968_s16 + $0x60] sm:$0xff]  ;;  %v946_v51 = vld [vmem:[#allocation2 + $0x32] sm:$0xff]  ;;  %v825_v58 = vmul.f32 %v2024_v49, %v717_v44  ;;  %v894_v1 = vmul.f32 %v2040_v55, %v719_v54  ;;  %v700_v5 = vld [vmem:[#allocation2 + $0x9] sm:$0xff]  ;;  %v2163_v16 = vmul.f32 %v2010_v43, %v717_v44  ;;  %v2166_v17 = vmul.f32 %v2010_v43, %v719_v54  ;;  %1757 = vmatpush3.bf16.msra.mxu0 %v2001_v40 }
  0x27   : > { %405 = vst [vmem:[#allocation2 + $0x60] sm:$0xff] %v2134_v46  ;;  %v2151_v31 = vmul.f32 %v2066_v6, %v946_v51  ;;  %v910_v62 = vadd.f32 %v878_v29, %v841_v47  ;;  %v2156_v63 = vmul.f32 %v2102_v22, %v946_v51  ;;  %v788_v0 = vadd.f32 %v756_v56, %v683_v32  ;;  %v2159_v12 = vld [vmem:[#allocation2 + $0x21] sm:$0xff]  ;;  %v2171_v27 = vld [vmem:[#allocation2 + $0xf2] sm:$0xff]  ;;  %v716_v35 = vld [vmem:[#allocation2 + $0xc9] sm:$0xff] }
  0x28   : > { %v1121_v15 = vmul.f32 %v2144_v53, %v946_v51  ;;  %3077 = vst [vmem:[#allocation8_spill] sm:$0xff] %v2166_v17  ;;  %v2169_v20 = vmul.f32 %v2024_v49, %v719_v54  ;;  %v960_v25 = vld [vmem:[#allocation2 + $0xda] sm:$0xff]  ;;  %1779 = vmatpush3.bf16.msra.mxu1 %v2001_v40  ;;  %v999_v32 = vmul.f32 %v2066_v6, %v958_v59  ;;  %v943_v40 = vld [vmem:[#allocation2 + $0xa] sm:$0xff] }
  0x29   : > { %3076 = vst [vmem:[#allocation7_spill] sm:$0xff] %v2151_v31  ;;  %v1015_v29 = vadd.f32 %v983_v39, %v910_v62  ;;  %v857_v30 = vadd.f32 %v825_v58, %v788_v0  ;;  %v2176_v33 = vld [vmem:[#allocation2 + $0x39] sm:$0xff]  ;;  %1759 = vmatprep.subr.bf16.mxu0 %v2003_v41  ;;  %1772 = vmatprep.subr.bf16.mxu1 %v2003_v41  ;;  %v2186_v39 = vld [vmem:[#allocation2 + $0x22] sm:$0xff]  ;;  %v959_v31 = vld [vmem:[#allocation2 + $0xca] sm:$0xff] }
  0x2a   : > { %v2181_v44 = vmul.f32 %v2066_v6, %v960_v25  ;;  %v741_v47 = vmul.f32 %v2010_v43, %v700_v5  ;;  %v810_v51 = vmul.f32 %v2024_v49, %v2159_v12  ;;  %v2188_v54 = vld [vmem:[#allocation2 + $0x3a] sm:$0xff]  ;;  %v1068_v59 = vmul.f32 %v2102_v22, %v960_v25  ;;  %v2203_v25 = vld [vmem:[#allocation2 + $0x49] sm:$0xff]  ;;  %1761 = vmatpush3.bf16.msra.mxu0 %v2003_v41 }
  0x2b   : > { %v1084_v56 = vadd.f32 %v1052_v57, %v1015_v29  ;;  %v926_v58 = vadd.f32 %v894_v1, %v857_v30  ;;  %v1137_v62 = vmul.f32 %v2144_v53, %v2171_v27  ;;  %v2193_v0 = vld [vmem:[#allocation2 + $0xe1] sm:$0xff]  ;;  %v2195_v5 = vld [vmem:[#allocation2 + $0xf9] sm:$0xff]  ;;  %v879_v3 = vmul.f32 %v2040_v55, %v2176_v33  ;;  %1763 = vmatprep.subr.bf16.mxu0 %v2005_v42  ;;  %v2263_v7 = vld [vmem:[#allocation2 + $0x109] sm:$0xff] }
  0x2c   : > { %v773_v17 = vadd.f32 %v741_v47, %v2090_v18  ;;  %v614_v57 = vadd.f32 %v2076_v9, %v2047_v60  ;;  %v757_v1 = vmul.f32 %v2010_v43, %v716_v35  ;;  %v2206_v29 = vld [vmem:[%s1968_s16 + $0x68] sm:$0xff]  ;;  %v2209_v30 = vld [vmem:[%s1968_s16 + $0x120] sm:$0xff]  ;;  %1780 = vmatpush3.bf16.msra.mxu1 %v2003_v41  ;;  %v984_v37 = vmul.f32 %v2066_v6, %v943_v40  ;;  %v359_v9 = vld [vmem:[%s1968_s16 + $0x70] sm:$0x3] }
  0x2d   : > { %3078 = vst [vmem:[#allocation9_spill] sm:$0xff] %v2206_v29  ;;  %v1153_v18 = vadd.f32 %v1121_v15, %v1084_v56  ;;  %v1031_v47 = vadd.f32 %v999_v32, %v926_v58  ;;  %406 = vst [vmem:[#allocation2 + $0x68] sm:$0xff] %v2206_v29  ;;  %v2216_v60 = vld [vmem:[%s1968_s16 + $0x128] sm:$0xff]  ;;  %v383_v35 = vld [vmem:[%s1968_s16 + $0x130] sm:$0x3]  ;;  %1773 = vmatprep.subr.bf16.mxu1 %v2005_v42  ;;  %v826_v32 = vmul.f32 %v2024_v49, %v2193_v0 }
  0x2e   : > { %3079 = vst [vmem:[#allocation10_spill] sm:$0xff] %v2216_v60  ;;  %429 = vst [vmem:[#allocation2 + $0x120] sm:$0xff] %v2209_v30  ;;  %v842_v41 = vadd.f32 %v810_v51, %v773_v17  ;;  %v684_v15 = vadd.f32 %v2080_v10, %v614_v57  ;;  %v2226_v40 = vld [vmem:[#allocation2 + $0xe2] sm:$0xff]  ;;  %v2230_v56 = vld [vmem:[%s1968_s16 + $0x78] sm:$0xff]  ;;  %v1053_v17 = vmul.f32 %v2102_v22, %v2186_v39  ;;  %1765 = vmatpush3.bf16.msra.mxu0 %v2005_v42 }
  0x2f   : > { %430 = vst [vmem:[#allocation2 + $0x128] sm:$0xff] %v2216_v60  ;;  %407 = vst [vmem:[#allocation2 + $0x70] sm:$0x3] %v359_v9  ;;  %v2233_v58 = vld [vmem:[%s1968_s16 + $0x80] sm:$0xff]  ;;  %v2236_v29 = vld [vmem:[%s1968_s16 + $0x138] sm:$0xff]  ;;  %1686 = vmatprep.mubr.f32.mxu0 %v1153_v18  ;;  %v1100_v10 = vadd.f32 %v1068_v59, %v1031_v47  ;;  %v2246_v51 = vmul.f32 %v2144_v53, %v2188_v54  ;;  %v895_v57 = vmul.f32 %v2040_v55, %v2195_v5 }
  0x30   : > { %431 = vst [vmem:[#allocation2 + $0x130] sm:$0x3] %v383_v35  ;;  %3080 = vst [vmem:[#allocation11_spill] sm:$0xff] %v2230_v56  ;;  %v2253_v9 = vld [vmem:[%s1968_s16 + $0x140] sm:$0xff]  ;;  %v362_v59 = vld [vmem:[%s1968_s16 + $0x88] sm:$0x3]  ;;  %v911_v47 = vadd.f32 %v879_v3, %v842_v41  ;;  %v789_v35 = vadd.f32 %v757_v1, %v684_v15  ;;  %v1000_v28 = vmul.f32 %v2066_v6, %v959_v31  ;;  %1781 = vmatpush3.bf16.msra.mxu1 %v2005_v42 }
  0x31   : > { %3081 = vst [vmem:[#allocation12_spill] sm:$0xff] %v2233_v58  ;;  %408 = vst [vmem:[#allocation2 + $0x78] sm:$0xff] %v2230_v56  ;;  %v386_v18 = vld [vmem:[%s1968_s16 + $0x148] sm:$0x3]  ;;  %v2258_v60 = vld [vmem:[#allocation2 + $0xfa] sm:$0xff]  ;;  %v669_v56 = vadd.f32 %v2106_v23, %v2049_v61  ;;  %v1169_v61 = vadd.f32 %v1137_v62, %v1100_v10  ;;  %v880_v23 = vmul.f32 %v2040_v55, %v2203_v25 }
  0x32   : > { %409 = vst [vmem:[#allocation2 + $0x80] sm:$0xff] %v2233_v58  ;;  %432 = vst [vmem:[#allocation2 + $0x138] sm:$0xff] %v2236_v29  ;;  %v2267_v58 = vld [vmem:[%s1968_s16 + $0x90] sm:$0xff]  ;;  %v2270_v3 = vld [vmem:[%s1968_s16 + $0x98] sm:$0xff]  ;;  %v615_v31 = vadd.f32 %v2072_v8, %v2094_v19  ;;  %v1016_v62 = vadd.f32 %v984_v37, %v911_v47  ;;  %v858_v10 = vadd.f32 %v826_v32, %v789_v35 }
  0x33   : > { %433 = vst [vmem:[#allocation2 + $0x140] sm:$0xff] %v2253_v9  ;;  %410 = vst [vmem:[#allocation2 + $0x88] sm:$0x3] %v362_v59  ;;  %v2273_v1 = vld [vmem:[%s1968_s16 + $0x150] sm:$0xff]  ;;  %v2284_v41 = vld [vmem:[%s1968_s16 + $0x158] sm:$0xff]  ;;  %v774_v8 = vadd.f32 %v2124_v36, %v669_v56  ;;  %v653_v19 = vmul.f32 %v1973_v21, %v2085_v11  ;;  %v2310_v37 = vmul.f32 %v2102_v22, %v2171_v27  ;;  %1710 = vmatprep.mubr.f32.mxu1 %v1169_v61 }
  0x34   : > { %434 = vst [vmem:[#allocation2 + $0x148] sm:$0x3] %v386_v18  ;;  %3082 = vst [vmem:[#allocation13_spill] sm:$0xff] %v2270_v3  ;;  %v365_v15 = vld [vmem:[%s1968_s16 + $0xa0] sm:$0x3]  ;;  %v2300_v59 = vld [vmem:[%s1968_s16 + $0xa8] sm:$0xff]  ;;  %v1069_v36 = vmul.f32 %v2102_v22, %v2226_v40  ;;  %v600_v32 = vadd.f32 %v2114_v26, %v2061_v4  ;;  %v743_v56 = vmul.f32 %v2010_v43, %v2159_v12 }
  0x35   : > { %3083 = vst [vmem:[#allocation14_spill] sm:$0xff] %v2273_v1  ;;  %411 = vst [vmem:[#allocation2 + $0x90] sm:$0xff] %v2267_v58  ;;  %v389_v42 = vld [vmem:[%s1968_s16 + $0x160] sm:$0x3]  ;;  %v2303_v18 = vld [vmem:[%s1968_s16 + $0xb0] sm:$0xff]  ;;  %v685_v4 = vadd.f32 %v653_v19, %v615_v31 }
  0x36   : > { %412 = vst [vmem:[#allocation2 + $0x98] sm:$0xff] %v2270_v3  ;;  %3084 = vst [vmem:[#allocation15_spill] sm:$0xff] %v2284_v41  ;;  %v2306_v3 = vld [vmem:[%s1968_s16 + $0x168] sm:$0xff]  ;;  %v2321_v47 = vld [vmem:[%s1968_s16 + $0x170] sm:$0xff] }
  0x37   : > { %435 = vst [vmem:[#allocation2 + $0x150] sm:$0xff] %v2273_v1  ;;  %436 = vst [vmem:[#allocation2 + $0x158] sm:$0xff] %v2284_v41  ;;  %v368_v35 = vld [vmem:[%s1968_s16 + $0xb8] sm:$0x3]  ;;  %v843_v41 = vadd.f32 %v2130_v38, %v774_v8  ;;  %v2327_v1 = vld [vmem:[#allocation2 + $0x4a] sm:$0xff]  ;;  %v812_v38 = vmul.f32 %v2024_v49, %v2176_v33  ;;  %v790_v8 = vadd.f32 %v2163_v16, %v685_v4 }
  0x38   : > { %413 = vst [vmem:[#allocation2 + $0xa0] sm:$0x3] %v365_v15  ;;  %437 = vst [vmem:[#allocation2 + $0x160] sm:$0x3] %v389_v42  ;;  %v392_v61 = vld [vmem:[%s1968_s16 + $0x178] sm:$0x3]  ;;  %v1085_v15 = vadd.f32 %v1053_v17, %v1016_v62  ;;  %v927_v42 = vadd.f32 %v895_v57, %v858_v10  ;;  %v896_v17 = vmul.f32 %v2040_v55, %v2263_v7  ;;  %s2960_s16 = scalar_lea.vmem %s3040_s5, %s1605_s15 }
  0x39   : > { %3085 = vst [vmem:[#allocation16_spill] sm:$0xff] %v2300_v59  ;;  %3086 = vst [vmem:[#allocation17_spill] sm:$0xff] %v2303_v18  ;;  %v2329_v26 = vld [vmem:[#allocation2 + $0x51] sm:$0xff]  ;;  %v2333_v12 = vld [vmem:[%s2293_s12] sm:$0xff]  ;;  %v670_v57 = vadd.f32 %v2120_v34, %v600_v32  ;;  %v912_v10 = vadd.f32 %v880_v23, %v843_v41  ;;  %v1123_v19 = vmul.f32 %v2144_v53, %v2327_v1 }
  0x3a   : > { %3087 = vst [vmem:[#allocation18_spill] sm:$0xff] %v2306_v3  ;;  %414 = vst [vmem:[#allocation2 + $0xa8] sm:$0xff] %v2300_v59  ;;  %v1154_v31 = vadd.f32 %v2246_v51, %v1085_v15  ;;  %v1032_v62 = vadd.f32 %v1000_v28, %v927_v42  ;;  %v514_v34 = vmul.f32 %v1938_v13, %v2014_v45  ;;  %v2353_v28 = vld [vmem:[#allocation2 + $0x10a] sm:$0xff]  ;;  %v2490_v59 = vld [vmem:[#allocation2 + $0x79] sm:$0xff] }
  0x3b   : > { %415 = vst [vmem:[#allocation2 + $0xb0] sm:$0xff] %v2303_v18  ;;  %3088 = vst [vmem:[#allocation19_spill] sm:$0xff] %v2321_v47  ;;  %v1138_v18 = vmul.f32 %v2144_v53, %v2258_v60  ;;  %v859_v51 = vadd.f32 %v2169_v20, %v790_v8  ;;  %v584_v16 = vmul.f32 %v1943_v14, %v2027_v50  ;;  %v2364_v20 = vld [vmem:[#allocation2 + $0x52] sm:$0xff] }
  0x3c   : > { %438 = vst [vmem:[#allocation2 + $0x168] sm:$0xff] %v2306_v3  ;;  %439 = vst [vmem:[#allocation2 + $0x170] sm:$0xff] %v2321_v47  ;;  %1687 = vmatmul.mubr.f32.vlgmr.msra.gmra.mrb[0].mxu0 %v1154_v31  ;;  %v1101_v32 = vadd.f32 %v1069_v36, %v1032_v62  ;;  %v986_v41 = vmul.f32 %v2066_v6, %v2186_v39  ;;  %v759_v45 = vmul.f32 %v2010_v43, %v2193_v0  ;;  %v2374_v31 = vld [vmem:[#allocation2 + $0x111] sm:$0xff] }
  0x3d   : > { %416 = vst [vmem:[#allocation2 + $0xb8] sm:$0x3] %v368_v35  ;;  %440 = vst [vmem:[#allocation2 + $0x178] sm:$0x3] %v392_v61  ;;  %v775_v35 = vadd.f32 %v743_v56, %v670_v57  ;;  %v881_v61 = vmul.f32 %v2040_v55, %v2329_v26  ;;  %v654_v56 = vmul.f32 %v1973_v21, %v2109_v24  ;;  %v2381_v62 = vld [vmem:[#allocation2 + $0x112] sm:$0xff] }
  0x3e   : > { %3089 = vst [vmem:[#allocation20_spill] sm:$0xff] %v2333_v12  ;;  %448 = vst [vmem:[#allocation2 + $0x180] sm:$0xff] %v2333_v12  ;;  %v1017_v12 = vadd.f32 %v2139_v52, %v912_v10  ;;  %v1170_v36 = vadd.f32 %v1138_v18, %v1101_v32  ;;  %v928_v15 = vadd.f32 %v896_v17, %v859_v51  ;;  %v3100_v47 = vld [vmem:[#allocation7_spill] sm:$0xff] }
  0x3f   : > { %v844_v23 = vadd.f32 %v812_v38, %v775_v35  ;;  %v616_v42 = vadd.f32 %v584_v16, %v514_v34  ;;  %v2368_v4 = vmul.f32 %v2066_v6, %v2171_v27  ;;  %v1139_v39 = vmul.f32 %v2144_v53, %v2353_v28  ;;  %v2392_v34 = vld [vmem:[#allocation2 + $0x61] sm:$0xff] }
  0x40   : > { %v1086_v52 = vadd.f32 %v2156_v63, %v1017_v12  ;;  %v1055_v38 = vmul.f32 %v2102_v22, %v2188_v54  ;;  %1711 = vmatmul.mubr.f32.vlgmr.msra.gmra.mrb[0].mxu1 %v1170_v36  ;;  %v1033_v63 = vadd.f32 %v2181_v44, %v928_v15  ;;  %v828_v12 = vmul.f32 %v2024_v49, %v2195_v5  ;;  %v446_v15 = vld [vmem:[%s2293_s12 + $0x28] sm:$0x3] }
  0x41   : > { %v913_v57 = vadd.f32 %v881_v61, %v844_v23  ;;  %v686_v18 = vadd.f32 %v654_v56, %v616_v42  ;;  %v1124_v17 = vmul.f32 %v2144_v53, %v2364_v20  ;;  %v569_v10 = vmul.f32 %v1943_v14, %v2054_v2  ;;  %v2400_v23 = vld [vmem:[%s2293_s12 + $0x8] sm:$0xff]  ;;  %v2404_v56 = vld [vmem:[%s2293_s12 + $0x18] sm:$0xff]  ;;  %453 = vst [vmem:[#allocation2 + $0x1a8] sm:$0x3] %v446_v15 }
  0x42   : > { %v1155_v0 = vadd.f32 %v1123_v19, %v1086_v52  ;;  %v639_v8 = vmul.f32 %v1973_v21, %v2134_v46  ;;  %v1102_v44 = vadd.f32 %v2310_v37, %v1033_v63  ;;  %v897_v35 = vmul.f32 %v2040_v55, %v2374_v31  ;;  %3090 = vst [vmem:[#allocation21_spill] sm:$0xff] %v2400_v23 }
  0x43   : > { %v1018_v27 = vadd.f32 %v986_v41, %v913_v57  ;;  %v791_v19 = vadd.f32 %v759_v45, %v686_v18  ;;  %v1002_v61 = vmul.f32 %v2066_v6, %v2226_v40  ;;  %v1071_v51 = vmul.f32 %v2102_v22, %v2258_v60  ;;  %v443_v41 = vld [vmem:[%s2293_s12 + $0x10] sm:$0x3]  ;;  %3091 = vst [vmem:[#allocation22_spill] sm:$0xff] %v2404_v56  ;;  %v2421_v18 = vld [vmem:[#allocation2 + $0x121] sm:$0xff] }
  0x44   : > { %1689 = vmatprep.mubr.f32.mxu0 %v1155_v0  ;;  %v601_v16 = vadd.f32 %v569_v10, %v2019_v48  ;;  %v585_v37 = vmul.f32 %v1943_v14, %v2085_v11  ;;  %v1171_v45 = vadd.f32 %v1139_v39, %v1102_v44  ;;  %v1140_v40 = vmul.f32 %v2144_v53, %v2381_v62  ;;  %v2412_v48 = vld [vmem:[%s2293_s12 + $0x20] sm:$0xff]  ;;  %v3094_v10 = vld [vmem:[#allocation3_spill] sm:$0xff]  ;;  %v3095_v44 = vld [vmem:[#allocation6_spill] sm:$0xff] }
  0x45   : > { %v1087_v32 = vadd.f32 %v1055_v38, %v1018_v27  ;;  %v860_v36 = vadd.f32 %v828_v12, %v791_v19  ;;  %v655_v52 = vmul.f32 %v1973_v21, %v2209_v30  ;;  %449 = vst [vmem:[#allocation2 + $0x188] sm:$0xff] %v2400_v23  ;;  %450 = vst [vmem:[#allocation2 + $0x190] sm:$0x3] %v443_v41  ;;  %v2418_v38 = vld [vmem:[#allocation2 + $0x62] sm:$0xff] }
  0x46   : > { %3092 = vst [vmem:[#allocation23_spill] sm:$0xff] %v2412_v48  ;;  %451 = vst [vmem:[#allocation2 + $0x198] sm:$0xff] %v2404_v56  ;;  %v671_v57 = vadd.f32 %v639_v8, %v601_v16  ;;  %v813_v39 = vmul.f32 %v2024_v49, %v2203_v25  ;;  %v3093_v0 = vld [vmem:[#allocation5_spill] sm:$0xff]  ;;  %1713 = vmatprep.mubr.f32.mxu1 %v1171_v45  ;;  %v882_v27 = vmul.f32 %v2040_v55, %v2392_v34  ;;  %v3096_v16 = vld [vmem:[#allocation4_spill] sm:$0xff] }
  0x47   : > { %v1156_v42 = vadd.f32 %v1124_v17, %v1087_v32  ;;  %v617_v63 = vadd.f32 %v585_v37, %v3093_v0  ;;  %452 = vst [vmem:[#allocation2 + $0x1a0] sm:$0xff] %v2412_v48  ;;  %v929_v12 = vadd.f32 %v897_v35, %v860_v36  ;;  %v829_v17 = vmul.f32 %v2024_v49, %v2263_v7  ;;  %v3097_v41 = vld [vmem:[#allocation9_spill] sm:$0xff] }
  0x48   : > { %v500_v8 = vmul.f32 %v1938_v13, %v3094_v10  ;;  %v776_v19 = vadd.f32 %v3095_v44, %v671_v57  ;;  %v570_v37 = vmul.f32 %v1943_v14, %v3096_v16  ;;  %v640_v45 = vmul.f32 %v1973_v21, %v3097_v41  ;;  %v3098_v10 = vld [vmem:[#allocation8_spill] sm:$0xff] }
  0x49   : > { %1690 = vmatmul.mubr.f32.gmra.mrb[2].mxu0 %v1156_v42  ;;  %v687_v32 = vadd.f32 %v655_v52, %v617_v63  ;;  %v1034_v35 = vadd.f32 %v1002_v61, %v929_v12  ;;  %v1056_v36 = vmul.f32 %v2102_v22, %v2327_v1  ;;  %v1125_v15 = vmul.f32 %v2144_v53, %v2418_v38  ;;  %v2442_v63 = vld [vmem:[#allocation2 + $0x69] sm:$0xff] }
  0x4a   : > { %v898_v0 = vmul.f32 %v2040_v55, %v2421_v18  ;;  %v845_v42 = vadd.f32 %v813_v39, %v776_v19  ;;  %v602_v52 = vadd.f32 %v570_v37, %v500_v8  ;;  %v745_v44 = vmul.f32 %v2010_v43, %v2176_v33  ;;  %v2452_v19 = vld [vmem:[#allocation2 + $0x122] sm:$0xff] }
  0x4b   : > { %v792_v57 = vadd.f32 %v3098_v10, %v687_v32  ;;  %v1103_v48 = vadd.f32 %v1071_v51, %v1034_v35  ;;  %v1072_v61 = vmul.f32 %v2102_v22, %v2353_v28  ;;  %v814_v12 = vmul.f32 %v2024_v49, %v2329_v26  ;;  %v3099_v51 = vld [vmem:[#allocation10_spill] sm:$0xff] }
  0x4c   : > { %v516_v56 = vmul.f32 %v1938_v13, %v2027_v50  ;;  %v914_v23 = vadd.f32 %v882_v27, %v845_v42  ;;  %v672_v8 = vadd.f32 %v640_v45, %v602_v52  ;;  %v586_v32 = vmul.f32 %v1943_v14, %v2109_v24 }
  0x4d   : > { %v861_v39 = vadd.f32 %v829_v17, %v792_v57  ;;  %v1172_v37 = vadd.f32 %v1140_v40, %v1103_v48  ;;  %v883_v33 = vmul.f32 %v2040_v55, %v2442_v63  ;;  %v656_v35 = vmul.f32 %v1973_v21, %v3099_v51  ;;  %v2463_v57 = vld [vmem:[#allocation2 + $0x129] sm:$0xff] }
  0x4e   : > { %v761_v10 = vmul.f32 %v2010_v43, %v2195_v5  ;;  %v1019_v50 = vadd.f32 %v3100_v47, %v914_v23  ;;  %v777_v17 = vadd.f32 %v745_v44, %v672_v8  ;;  %v618_v42 = vadd.f32 %v586_v32, %v516_v56  ;;  %v2474_v56 = vld [vmem:[#allocation2 + $0x6a] sm:$0xff] }
  0x4f   : > { %v930_v27 = vadd.f32 %v898_v0, %v861_v39  ;;  %1714 = vmatmul.mubr.f32.gmra.mrb[2].mxu1 %v1172_v37  ;;  %v1141_v40 = vmul.f32 %v2144_v53, %v2452_v19  ;;  %v988_v48 = vmul.f32 %v2066_v6, %v2188_v54  ;;  %v1057_v45 = vmul.f32 %v2102_v22, %v2364_v20  ;;  %v3101_v8 = vld [vmem:[#allocation11_spill] sm:$0xff] }
  0x50   : > { %v830_v5 = vmul.f32 %v2024_v49, %v2374_v31  ;;  %v1088_v52 = vadd.f32 %v1056_v36, %v1019_v50  ;;  %v846_v23 = vadd.f32 %v814_v12, %v777_v17  ;;  %v688_v0 = vadd.f32 %v656_v35, %v618_v42 }
  0x51   : > { %v1035_v47 = vadd.f32 %v2368_v4, %v930_v27  ;;  %v899_v44 = vmul.f32 %v2040_v55, %v2463_v57  ;;  %v501_v39 = vmul.f32 %v1938_v13, %v2054_v2  ;;  %v571_v54 = vmul.f32 %v1943_v14, %v2134_v46 }
  0x52   : > { %v641_v32 = vmul.f32 %v1973_v21, %v3101_v8  ;;  %v1157_v37 = vadd.f32 %v1125_v15, %v1088_v52  ;;  %v915_v50 = vadd.f32 %v883_v33, %v846_v23  ;;  %v793_v4 = vadd.f32 %v761_v10, %v688_v0  ;;  %v2492_v15 = vld [vmem:[#allocation2 + $0x12a] sm:$0xff] }
  0x53   : > { %v1104_v36 = vadd.f32 %v1072_v61, %v1035_v47  ;;  %v1126_v12 = vmul.f32 %v2144_v53, %v2474_v56  ;;  %v603_v35 = vadd.f32 %v571_v54, %v501_v39  ;;  %v746_v27 = vmul.f32 %v2010_v43, %v2203_v25 }
  0x54   : > { %1692 = vmatprep.mubr.f32.mxu0 %v1157_v37  ;;  %v1020_v2 = vadd.f32 %v988_v48, %v915_v50  ;;  %v862_v42 = vadd.f32 %v830_v5, %v793_v4  ;;  %v1004_v3 = vmul.f32 %v2066_v6, %v2258_v60  ;;  %v815_v33 = vmul.f32 %v2024_v49, %v2392_v34 }
  0x55   : > { %v1173_v17 = vadd.f32 %v1141_v40, %v1104_v36  ;;  %v673_v61 = vadd.f32 %v641_v32, %v603_v35  ;;  %v517_v10 = vmul.f32 %v1938_v13, %v2085_v11  ;;  %v587_v25 = vmul.f32 %v1943_v14, %v2209_v30  ;;  %v2514_v32 = vld [vmem:[#allocation2 + $0x139] sm:$0xff] }
  0x56   : > { %v1089_v40 = vadd.f32 %v1057_v45, %v1020_v2  ;;  %v931_v48 = vadd.f32 %v899_v44, %v862_v42  ;;  %v1073_v60 = vmul.f32 %v2102_v22, %v2381_v62  ;;  %v657_v5 = vmul.f32 %v1973_v21, %v2236_v29  ;;  %v2510_v44 = vld [vmem:[#allocation2 + $0x7a] sm:$0xff] }
  0x57   : > { %1716 = vmatprep.mubr.f32.mxu1 %v1173_v17  ;;  %v778_v52 = vadd.f32 %v746_v27, %v673_v61  ;;  %v884_v47 = vmul.f32 %v2040_v55, %v2490_v59  ;;  %v619_v23 = vadd.f32 %v587_v25, %v517_v10  ;;  %v762_v11 = vmul.f32 %v2010_v43, %v2263_v7  ;;  %v3102_v35 = vld [vmem:[#allocation12_spill] sm:$0xff]  ;;  %v2534_v25 = vld [vmem:[#allocation2 + $0x81] sm:$0xff] }
  0x58   : > { %v1158_v0 = vadd.f32 %v1126_v12, %v1089_v40  ;;  %v1036_v39 = vadd.f32 %v1004_v3, %v931_v48  ;;  %v1142_v45 = vmul.f32 %v2144_v53, %v2492_v15  ;;  %v989_v54 = vmul.f32 %v2066_v6, %v2327_v1  ;;  %v2530_v61 = vld [vmem:[#allocation2 + $0x13a] sm:$0xff] }
  0x59   : > { %v847_v37 = vadd.f32 %v815_v33, %v778_v52  ;;  %v689_v36 = vadd.f32 %v657_v5, %v619_v23  ;;  %v831_v50 = vmul.f32 %v2024_v49, %v2421_v18  ;;  %v502_v7 = vmul.f32 %v1938_v13, %v3096_v16 }
  0x5a   : > { %1693 = vmatmul.mubr.f32.gmra.mrb[4].mxu0 %v1158_v0  ;;  %v1105_v3 = vadd.f32 %v1073_v60, %v1036_v39  ;;  %v1058_v4 = vmul.f32 %v2102_v22, %v2418_v38  ;;  %v572_v12 = vmul.f32 %v1943_v14, %v3097_v41  ;;  %v642_v1 = vmul.f32 %v1973_v21, %v3102_v35 }
  0x5b   : > { %v916_v27 = vadd.f32 %v884_v47, %v847_v37  ;;  %v1127_v17 = vmul.f32 %v2144_v53, %v2510_v44  ;;  %v794_v2 = vadd.f32 %v762_v11, %v689_v36  ;;  %v900_v42 = vmul.f32 %v2040_v55, %v2514_v32 }
  0x5c   : > { %v1174_v16 = vadd.f32 %v1142_v45, %v1105_v3  ;;  %v1005_v33 = vmul.f32 %v2066_v6, %v2353_v28  ;;  %v604_v10 = vadd.f32 %v572_v12, %v502_v7  ;;  %v747_v40 = vmul.f32 %v2010_v43, %v2329_v26 }
  0x5d   : > { %v1021_v48 = vadd.f32 %v989_v54, %v916_v27  ;;  %v863_v60 = vadd.f32 %v831_v50, %v794_v2  ;;  %v1074_v5 = vmul.f32 %v2102_v22, %v2452_v19  ;;  %v518_v52 = vmul.f32 %v1938_v13, %v2109_v24  ;;  %v2552_v54 = vld [vmem:[#allocation2 + $0x82] sm:$0xff] }
  0x5e   : > { %1717 = vmatmul.mubr.f32.gmra.mrb[4].mxu1 %v1174_v16  ;;  %v674_v47 = vadd.f32 %v642_v1, %v604_v10  ;;  %v816_v23 = vmul.f32 %v2024_v49, %v2442_v63  ;;  %v588_v28 = vmul.f32 %v1943_v14, %v3099_v51  ;;  %v658_v11 = vmul.f32 %v1973_v21, %v2253_v9  ;;  %v2556_v50 = vld [vmem:[#allocation2 + $0x141] sm:$0xff] }
  0x5f   : > { %v1090_v26 = vadd.f32 %v1058_v4, %v1021_v48  ;;  %v932_v0 = vadd.f32 %v900_v42, %v863_v60  ;;  %v1143_v39 = vmul.f32 %v2144_v53, %v2530_v61  ;;  %v885_v45 = vmul.f32 %v2040_v55, %v2534_v25  ;;  %v2574_v48 = vld [vmem:[#allocation2 + $0x91] sm:$0xff] }
  0x60   : > { %v779_v24 = vadd.f32 %v747_v40, %v674_v47  ;;  %v990_v37 = vmul.f32 %v2066_v6, %v2364_v20  ;;  %v620_v36 = vadd.f32 %v588_v28, %v518_v52  ;;  %v763_v7 = vmul.f32 %v2010_v43, %v2374_v31 }
  0x61   : > { %v1159_v3 = vadd.f32 %v1127_v17, %v1090_v26  ;;  %v1037_v4 = vadd.f32 %v1005_v33, %v932_v0  ;;  %v832_v12 = vmul.f32 %v2024_v49, %v2463_v57  ;;  %v503_v1 = vmul.f32 %v1938_v13, %v2134_v46  ;;  %v2584_v26 = vld [vmem:[#allocation2 + $0x142] sm:$0xff] }
  0x62   : > { %v848_v27 = vadd.f32 %v816_v23, %v779_v24  ;;  %v690_v2 = vadd.f32 %v658_v11, %v620_v36  ;;  %v573_v42 = vmul.f32 %v1943_v14, %v3101_v8  ;;  %v643_v20 = vmul.f32 %v1973_v21, %v2267_v58 }
  0x63   : > { %1695 = vmatprep.mubr.f32.mxu0 %v1159_v3  ;;  %v1106_v16 = vadd.f32 %v1074_v5, %v1037_v4  ;;  %v1059_v31 = vmul.f32 %v2102_v22, %v2474_v56  ;;  %v1128_v17 = vmul.f32 %v2144_v53, %v2552_v54  ;;  %v901_v33 = vmul.f32 %v2040_v55, %v2556_v50  ;;  %v2596_v3 = vld [vmem:[#allocation2 + $0x92] sm:$0xff] }
  0x64   : > { %v917_v46 = vadd.f32 %v885_v45, %v848_v27  ;;  %v795_v10 = vadd.f32 %v763_v7, %v690_v2  ;;  %v605_v40 = vadd.f32 %v573_v42, %v503_v1  ;;  %v748_v60 = vmul.f32 %v2010_v43, %v2392_v34  ;;  %v2602_v1 = vld [vmem:[#allocation2 + $0x151] sm:$0xff] }
  0x65   : > { %v1175_v52 = vadd.f32 %v1143_v39, %v1106_v16  ;;  %v1006_v5 = vmul.f32 %v2066_v6, %v2381_v62  ;;  %v817_v47 = vmul.f32 %v2024_v49, %v2490_v59  ;;  %v519_v23 = vmul.f32 %v1938_v13, %v2209_v30  ;;  %v3103_v39 = vld [vmem:[#allocation14_spill] sm:$0xff] }
  0x66   : > { %v1022_v28 = vadd.f32 %v990_v37, %v917_v46  ;;  %v864_v11 = vadd.f32 %v832_v12, %v795_v10  ;;  %v675_v0 = vadd.f32 %v643_v20, %v605_v40  ;;  %v589_v45 = vmul.f32 %v1943_v14, %v2236_v29  ;;  %v3104_v10 = vld [vmem:[#allocation13_spill] sm:$0xff] }
  0x67   : > { %1719 = vmatprep.mubr.f32.mxu1 %v1175_v52  ;;  %v1075_v34 = vmul.f32 %v2102_v22, %v2492_v15  ;;  %v886_v62 = vmul.f32 %v2040_v55, %v2574_v48  ;;  %v659_v24 = vmul.f32 %v1973_v21, %v3103_v39  ;;  %v764_v30 = vmul.f32 %v2010_v43, %v2421_v18  ;;  %v2623_v52 = vld [vmem:[#allocation2 + $0x152] sm:$0xff] }
  0x68   : > { %v1091_v37 = vadd.f32 %v1059_v31, %v1022_v28  ;;  %v933_v36 = vadd.f32 %v901_v33, %v864_v11  ;;  %v780_v7 = vadd.f32 %v748_v60, %v675_v0  ;;  %v621_v4 = vadd.f32 %v589_v45, %v519_v23  ;;  %v2629_v28 = vld [vmem:[#allocation2 + $0x99] sm:$0xff] }
  0x69   : > { %v1144_v14 = vmul.f32 %v2144_v53, %v2584_v26  ;;  %v991_v12 = vmul.f32 %v2066_v6, %v2418_v38  ;;  %v833_v27 = vmul.f32 %v2024_v49, %v2514_v32  ;;  %v504_v18 = vmul.f32 %v1938_v13, %v3097_v41  ;;  %v2615_v38 = vld [vmem:[%s3037_s2 + $0x4] ss:$0 sm:$0xff] }
  0x6a   : > { %v1160_v2 = vadd.f32 %v1128_v17, %v1091_v37  ;;  %v1038_v42 = vadd.f32 %v1006_v5, %v933_v36  ;;  %v849_v20 = vadd.f32 %v817_v47, %v780_v7  ;;  %v691_v16 = vadd.f32 %v659_v24, %v621_v4  ;;  %v3105_v37 = vld [vmem:[#allocation15_spill] sm:$0xff] }
  0x6b   : > { %v1060_v31 = vmul.f32 %v2102_v22, %v2510_v44  ;;  %v1129_v33 = vmul.f32 %v2144_v53, %v2596_v3  ;;  %v574_v46 = vmul.f32 %v2615_v38, %v3102_v35  ;;  %v644_v13 = vmul.f32 %v1973_v21, %v3104_v10 }
  0x6c   : > { %1696 = vmatmul.mubr.f32.gmra.mrb[6].mxu0 %v1160_v2  ;;  %v1107_v41 = vadd.f32 %v1075_v34, %v1038_v42  ;;  %v918_v17 = vadd.f32 %v886_v62, %v849_v20  ;;  %v796_v40 = vadd.f32 %v764_v30, %v691_v16  ;;  %v902_v60 = vmul.f32 %v2040_v55, %v2602_v1  ;;  %v2636_v34 = vld [vmem:[%s3037_s2] ss:$0 sm:$0xff] }
  0x6d   : > { %v1007_v5 = vmul.f32 %v2066_v6, %v2452_v19  ;;  %v1076_v47 = vmul.f32 %v2102_v22, %v2530_v61  ;;  %v606_v23 = vadd.f32 %v574_v46, %v504_v18  ;;  %v749_v21 = vmul.f32 %v2010_v43, %v2442_v63  ;;  %v2647_v63 = vld [vmem:[%s3037_s2 + $0x8] ss:$0 sm:$0xff]  ;;  %v2659_v42 = vld [vmem:[#allocation2 + $0x159] sm:$0xff] }
  0x6e   : > { %v1176_v11 = vadd.f32 %v1144_v14, %v1107_v41  ;;  %v1023_v0 = vadd.f32 %v991_v12, %v918_v17  ;;  %v865_v45 = vadd.f32 %v833_v27, %v796_v40  ;;  %v520_v19 = vmul.f32 %v2636_v34, %v3099_v51  ;;  %v2655_v27 = vld [vmem:[#allocation2 + $0x9a] sm:$0xff] }
  0x6f   : > { %v676_v62 = vadd.f32 %v644_v13, %v606_v23  ;;  %v818_v24 = vmul.f32 %v2024_v49, %v2534_v25  ;;  %v590_v30 = vmul.f32 %v2615_v38, %v2253_v9  ;;  %v660_v36 = vmul.f32 %v2647_v63, %v3105_v37 }
  0x70   : > { %1720 = vmatmul.mubr.f32.gmra.mrb[6].mxu1 %v1176_v11  ;;  %v1092_v7 = vadd.f32 %v1060_v31, %v1023_v0  ;;  %v934_v4 = vadd.f32 %v902_v60, %v865_v45  ;;  %v1145_v51 = vmul.f32 %v2144_v53, %v2623_v52  ;;  %v887_v14 = vmul.f32 %v2040_v55, %v2629_v28  ;;  %v2682_v11 = vld [vmem:[%s3037_s2 + $0x1] ss:$0 sm:$0xff] }
  0x71   : > { %v781_v12 = vadd.f32 %v749_v21, %v676_v62  ;;  %v992_v18 = vmul.f32 %v2066_v6, %v2474_v56  ;;  %v622_v2 = vadd.f32 %v590_v30, %v520_v19  ;;  %v765_v20 = vmul.f32 %v2010_v43, %v2463_v57  ;;  %v3106_v56 = vld [vmem:[#allocation16_spill] sm:$0xff]  ;;  %v2677_v21 = vld [vmem:[#allocation2 + $0xa9] sm:$0xff] }
  0x72   : > { %v1161_v16 = vadd.f32 %v1129_v33, %v1092_v7  ;;  %v1039_v31 = vadd.f32 %v1007_v5, %v934_v4  ;;  %v834_v46 = vmul.f32 %v2024_v49, %v2556_v50  ;;  %v505_v13 = vmul.f32 %v2636_v34, %v3101_v8  ;;  %v2706_v4 = vld [vmem:[%s3037_s2 + $0x9] ss:$0 sm:$0xff] }
  0x73   : > { %v850_v41 = vadd.f32 %v818_v24, %v781_v12  ;;  %v692_v17 = vadd.f32 %v660_v36, %v622_v2  ;;  %v575_v40 = vmul.f32 %v2615_v38, %v2267_v58  ;;  %v645_v60 = vmul.f32 %v2647_v63, %v3106_v56  ;;  %v2697_v36 = vld [vmem:[#allocation2 + $0x15a] sm:$0xff] }
  0x74   : > { %1698 = vmatprep.mubr.f32.mxu0 %v1161_v16  ;;  %v1108_v23 = vadd.f32 %v1076_v47, %v1039_v31  ;;  %v1061_v43 = vmul.f32 %v2102_v22, %v2552_v54  ;;  %v1130_v57 = vmul.f32 %v2144_v53, %v2655_v27  ;;  %v903_v49 = vmul.f32 %v2040_v55, %v2659_v42  ;;  %v2691_v55 = vld [vmem:[%s3037_s2 + $0x5] ss:$0 sm:$0xff]  ;;  %v2714_v16 = vld [vmem:[#allocation2 + $0xaa] sm:$0xff] }
  0x75   : > { %v919_v8 = vadd.f32 %v887_v14, %v850_v41  ;;  %v797_v33 = vadd.f32 %v765_v20, %v692_v17  ;;  %v607_v5 = vadd.f32 %v575_v40, %v505_v13  ;;  %v750_v47 = vmul.f32 %v2682_v11, %v2490_v59  ;;  %v2720_v41 = vld [vmem:[#allocation2 + $0x169] sm:$0xff] }
  0x76   : > { %v1177_v0 = vadd.f32 %v1145_v51, %v1108_v23  ;;  %v1008_v45 = vmul.f32 %v2066_v6, %v2492_v15  ;;  %v819_v19 = vmul.f32 %v2691_v55, %v2574_v48  ;;  %v521_v62 = vmul.f32 %v2636_v34, %v2236_v29  ;;  %v3107_v51 = vld [vmem:[#allocation18_spill] sm:$0xff] }
  0x77   : > { %v1024_v24 = vadd.f32 %v992_v18, %v919_v8  ;;  %v866_v30 = vadd.f32 %v834_v46, %v797_v33  ;;  %v677_v59 = vadd.f32 %v645_v60, %v607_v5  ;;  %v591_v7 = vmul.f32 %v2615_v38, %v3103_v39 }
  0x78   : > { %1722 = vmatprep.mubr.f32.mxu1 %v1177_v0  ;;  %v1077_v15 = vmul.f32 %v2102_v22, %v2584_v26  ;;  %v888_v29 = vmul.f32 %v2706_v4, %v2677_v21  ;;  %v661_v14 = vmul.f32 %v2647_v63, %v3107_v51  ;;  %v766_v12 = vmul.f32 %v2682_v11, %v2514_v32  ;;  %v2736_v0 = vld [vmem:[#allocation2 + $0x16a] sm:$0xff] }
  0x79   : > { %v1093_v18 = vadd.f32 %v1061_v43, %v1024_v24  ;;  %v935_v2 = vadd.f32 %v903_v49, %v866_v30  ;;  %v782_v20 = vadd.f32 %v750_v47, %v677_v59  ;;  %v623_v31 = vadd.f32 %v591_v7, %v521_v62  ;;  %v2747_v30 = vld [vmem:[#allocation2 + $0xb1] sm:$0xff] }
  0x7a   : > { %v1146_v46 = vmul.f32 %v2144_v53, %v2697_v36  ;;  %v993_v13 = vmul.f32 %v2066_v6, %v2510_v44  ;;  %v835_v17 = vmul.f32 %v2691_v55, %v2602_v1  ;;  %v506_v32 = vmul.f32 %v2636_v34, %v3102_v35  ;;  %v3108_v44 = vld [vmem:[#allocation17_spill] sm:$0xff] }
  0x7b   : > { %v1162_v40 = vadd.f32 %v1130_v57, %v1093_v18  ;;  %v1040_v60 = vadd.f32 %v1008_v45, %v935_v2  ;;  %v851_v23 = vadd.f32 %v819_v19, %v782_v20  ;;  %v693_v43 = vadd.f32 %v661_v14, %v623_v31  ;;  %v2741_v45 = vld [vmem:[%s3037_s2 + $0x2] ss:$0 sm:$0xff] }
  0x7c   : > { %v1062_v49 = vmul.f32 %v2102_v22, %v2596_v3  ;;  %v1131_v8 = vmul.f32 %v2144_v53, %v2714_v16  ;;  %v576_v6 = vmul.f32 %v2615_v38, %v3104_v10  ;;  %v646_v33 = vmul.f32 %v2647_v63, %v3108_v44 }
  0x7d   : > { %1699 = vmatmul.mubr.f32.gmra.mrb[8].mxu0 %v1162_v40  ;;  %v1109_v5 = vadd.f32 %v1077_v15, %v1040_v60  ;;  %v920_v47 = vadd.f32 %v888_v29, %v851_v23  ;;  %v798_v35 = vadd.f32 %v766_v12, %v693_v43  ;;  %v904_v57 = vmul.f32 %v2706_v4, %v2720_v41  ;;  %v2767_v40 = vld [vmem:[#allocation2 + $0x171] sm:$0xff] }
  0x7e   : > { %v1009_v19 = vmul.f32 %v2741_v45, %v2530_v61  ;;  %v1078_v62 = vmul.f32 %v2102_v22, %v2623_v52  ;;  %v608_v24 = vadd.f32 %v576_v6, %v506_v32  ;;  %v751_v59 = vmul.f32 %v2682_v11, %v2534_v25  ;;  %v3109_v22 = vld [vmem:[#allocation19_spill] sm:$0xff] }
  0x7f   : > { %v1178_v7 = vadd.f32 %v1146_v46, %v1109_v5  ;;  %v1025_v15 = vadd.f32 %v993_v13, %v920_v47  ;;  %v867_v29 = vadd.f32 %v835_v17, %v798_v35  ;;  %v522_v14 = vmul.f32 %v2636_v34, %v2253_v9  ;;  %v2763_v13 = vld [vmem:[#allocation2 + $0xb2] sm:$0xff] }
  0x80   : > { %v678_v12 = vadd.f32 %v646_v33, %v608_v24  ;;  %v820_v18 = vmul.f32 %v2691_v55, %v2629_v28  ;;  %v592_v61 = vmul.f32 %v2615_v38, %v3105_v37  ;;  %v662_v2 = vmul.f32 %v2647_v63, %v3109_v22 }
  0x81   : > { %1723 = vmatmul.mubr.f32.gmra.mrb[8].mxu1 %v1178_v7  ;;  %v1094_v20 = vadd.f32 %v1062_v49, %v1025_v15  ;;  %v936_v31 = vadd.f32 %v904_v57, %v867_v29  ;;  %v1147_v25 = vmul.f32 %v2144_v53, %v2736_v0  ;;  %v889_v46 = vmul.f32 %v2706_v4, %v2747_v30 }
  0x82   : > { %v783_v9 = vadd.f32 %v751_v59, %v678_v12  ;;  %v994_v17 = vmul.f32 %v2741_v45, %v2552_v54  ;;  %v624_v32 = vadd.f32 %v592_v61, %v522_v14  ;;  %v767_v60 = vmul.f32 %v2682_v11, %v2556_v50  ;;  %v2777_v54 = vld [vmem:[#allocation2 + $0xc0] sm:$0xff]  ;;  %v2800_v61 = vld [vmem:[#allocation2 + $0x172] sm:$0xff] }
  0x83   : > { %v1163_v23 = vadd.f32 %v1131_v8, %v1094_v20  ;;  %v1041_v43 = vadd.f32 %v1009_v19, %v936_v31  ;;  %v836_v49 = vmul.f32 %v2691_v55, %v2659_v42  ;;  %v507_v6 = vmul.f32 %v2636_v34, %v2267_v58  ;;  %v2784_v8 = vld [vmem:[%s3037_s2 + $0x6] ss:$0 sm:$0xff] }
  0x84   : > { %v852_v33 = vadd.f32 %v820_v18, %v783_v9  ;;  %v694_v5 = vadd.f32 %v662_v2, %v624_v32  ;;  %v577_v47 = vmul.f32 %v2615_v38, %v3106_v56  ;;  %v647_v35 = vmul.f32 %v2777_v54, %v2647_v63  ;;  %v2806_v31 = vld [vmem:[#allocation2 + $0xc1] sm:$0xff] }
  0x85   : > { %1701 = vmatprep.mubr.f32.mxu0 %v1163_v23  ;;  %v1110_v50 = vadd.f32 %v1078_v62, %v1041_v43  ;;  %v1063_v58 = vmul.f32 %v2784_v8, %v2655_v27  ;;  %v1132_v57 = vmul.f32 %v2144_v53, %v2763_v13  ;;  %v905_v19 = vmul.f32 %v2706_v4, %v2767_v40  ;;  %v2817_v23 = vld [vmem:[%s3037_s2 + $0xa] ss:$0 sm:$0xff] }
  0x86   : > { %v921_v24 = vadd.f32 %v889_v46, %v852_v33  ;;  %v799_v59 = vadd.f32 %v767_v60, %v694_v5  ;;  %v609_v7 = vadd.f32 %v577_v47, %v507_v6  ;;  %v752_v62 = vmul.f32 %v2682_v11, %v2574_v48  ;;  %v2823_v6 = vld [vmem:[#allocation2 + $0x181] sm:$0xff] }
  0x87   : > { %v1179_v15 = vadd.f32 %v1147_v25, %v1110_v50  ;;  %v1010_v29 = vmul.f32 %v2741_v45, %v2584_v26  ;;  %v821_v14 = vmul.f32 %v2691_v55, %v2677_v21  ;;  %v523_v12 = vmul.f32 %v2636_v34, %v3103_v39  ;;  %v3110_v25 = vld [vmem:[#allocation20_spill] sm:$0xff] }
  0x88   : > { %v1026_v53 = vadd.f32 %v994_v17, %v921_v24  ;;  %v868_v18 = vadd.f32 %v836_v49, %v799_v59  ;;  %v679_v2 = vadd.f32 %v647_v35, %v609_v7  ;;  %v593_v20 = vmul.f32 %v2615_v38, %v3107_v51  ;;  %v2837_v59 = vld [vmem:[#allocation2 + $0xc8] sm:$0xff] }
  0x89   : > { %1725 = vmatprep.mubr.f32.mxu1 %v1179_v15  ;;  %v1079_v48 = vmul.f32 %v2784_v8, %v2697_v36  ;;  %v890_v26 = vmul.f32 %v2806_v31, %v2706_v4  ;;  %v663_v39 = vmul.f32 %v2647_v63, %v3110_v25  ;;  %v768_v46 = vmul.f32 %v2682_v11, %v2602_v1 }
  0x8a   : > { %v1095_v9 = vadd.f32 %v1063_v58, %v1026_v53  ;;  %v937_v17 = vadd.f32 %v905_v19, %v868_v18  ;;  %v784_v32 = vadd.f32 %v752_v62, %v679_v2  ;;  %v625_v60 = vadd.f32 %v593_v20, %v523_v12  ;;  %v2831_v19 = vld [vmem:[#allocation2 + $0xc2] sm:$0xff] }
  0x8b   : > { %v1148_v43 = vmul.f32 %v2817_v23, %v2800_v61  ;;  %v995_v49 = vmul.f32 %v2741_v45, %v2596_v3  ;;  %v837_v1 = vmul.f32 %v2691_v55, %v2720_v41  ;;  %v508_v33 = vmul.f32 %v2636_v34, %v3104_v10 }
  0x8c   : > { %v1164_v5 = vadd.f32 %v1132_v57, %v1095_v9  ;;  %v1042_v47 = vadd.f32 %v1010_v29, %v937_v17  ;;  %v853_v35 = vadd.f32 %v821_v14, %v784_v32  ;;  %v695_v50 = vadd.f32 %v663_v39, %v625_v60  ;;  %v2843_v29 = vld [vmem:[#allocation2 + $0x182] sm:$0xff] }
  0x8d   : > { %v1064_v58 = vmul.f32 %v2784_v8, %v2714_v16  ;;  %v1133_v3 = vmul.f32 %v2831_v19, %v2817_v23  ;;  %v578_v24 = vmul.f32 %v2615_v38, %v3108_v44  ;;  %v648_v10 = vmul.f32 %v2837_v59, %v2647_v63  ;;  %v3111_v9 = vld [vmem:[#allocation21_spill] sm:$0xff] }
  0x8e   : > { %1702 = vmatmul.mubr.f32.gmra.mrb[10].mxu0 %v1164_v5  ;;  %v1111_v57 = vadd.f32 %v1079_v48, %v1042_v47  ;;  %v922_v7 = vadd.f32 %v890_v26, %v853_v35  ;;  %v800_v62 = vadd.f32 %v768_v46, %v695_v50  ;;  %v906_v15 = vmul.f32 %v2706_v4, %v2823_v6  ;;  %v2867_v5 = vld [vmem:[#allocation2 + $0x189] sm:$0xff] }
  0x8f   : > { %v1011_v14 = vmul.f32 %v2741_v45, %v2623_v52  ;;  %v1080_v12 = vmul.f32 %v2784_v8, %v2736_v0  ;;  %v610_v53 = vadd.f32 %v578_v24, %v508_v33  ;;  %v753_v18 = vmul.f32 %v2682_v11, %v2629_v28 }
  0x90   : > { %v1180_v2 = vadd.f32 %v1148_v43, %v1111_v57  ;;  %v1027_v20 = vadd.f32 %v995_v49, %v922_v7  ;;  %v869_v48 = vadd.f32 %v837_v1, %v800_v62  ;;  %v524_v26 = vmul.f32 %v2636_v34, %v3105_v37  ;;  %v2861_v43 = vld [vmem:[#allocation2 + $0xc9] sm:$0xff] }
  0x91   : > { %v680_v39 = vadd.f32 %v648_v10, %v610_v53  ;;  %v822_v46 = vmul.f32 %v2691_v55, %v2747_v30  ;;  %v594_v52 = vmul.f32 %v2615_v38, %v3109_v22  ;;  %v664_v17 = vmul.f32 %v2647_v63, %v3111_v9 }
  0x92   : > { %1726 = vmatmul.mubr.f32.gmra.mrb[10].mxu1 %v1180_v2  ;;  %v1096_v32 = vadd.f32 %v1064_v58, %v1027_v20  ;;  %v938_v60 = vadd.f32 %v906_v15, %v869_v48  ;;  %v1149_v28 = vmul.f32 %v2817_v23, %v2843_v29  ;;  %v891_v37 = vmul.f32 %v2861_v43, %v2706_v4 }
  0x93   : > { %v785_v49 = vadd.f32 %v753_v18, %v680_v39  ;;  %v996_v1 = vmul.f32 %v2741_v45, %v2655_v27  ;;  %v626_v33 = vadd.f32 %v594_v52, %v524_v26  ;;  %v769_v47 = vmul.f32 %v2682_v11, %v2659_v42  ;;  %v1823_v27 = vld [vmem:[#allocation2 + $0xd8] sm:$0xff]  ;;  %v2894_v52 = vld [vmem:[#allocation2 + $0x18a] sm:$0xff] }
  0x94   : > { %v1165_v35 = vadd.f32 %v1133_v3, %v1096_v32  ;;  %v1043_v50 = vadd.f32 %v1011_v14, %v938_v60  ;;  %v838_v58 = vmul.f32 %v2691_v55, %v2767_v40  ;;  %v509_v24 = vmul.f32 %v2636_v34, %v3106_v56  ;;  %v2880_v3 = vld [vmem:[#allocation2 + $0xca] sm:$0xff]  ;;  %v1825_v60 = vld [vmem:[#allocation2 + $0xd9] sm:$0xff] }
  0x95   : > { %v854_v10 = vadd.f32 %v822_v46, %v785_v49  ;;  %v696_v57 = vadd.f32 %v664_v17, %v626_v33  ;;  %v579_v7 = vmul.f32 %v2777_v54, %v2615_v38  ;;  %v649_v62 = vmul.f32 %v1823_v27, %v2647_v63 }
  0x96   : > { %1704 = vmatprep.mubr.f32.mxu0 %v1165_v35  ;;  %v1112_v15 = vadd.f32 %v1080_v12, %v1043_v50  ;;  %v1065_v42 = vmul.f32 %v2784_v8, %v2763_v13  ;;  %v1134_v14 = vmul.f32 %v2880_v3, %v2817_v23  ;;  %v907_v56 = vmul.f32 %v2706_v4, %v2867_v5  ;;  %v733_v35 = vld [vmem:[#allocation2 + $0x199] sm:$0xff] }
  0x97   : > { %v923_v53 = vadd.f32 %v891_v37, %v854_v10  ;;  %v801_v18 = vadd.f32 %v769_v47, %v696_v57  ;;  %v611_v2 = vadd.f32 %v579_v7, %v509_v24  ;;  %v754_v54 = vmul.f32 %v2682_v11, %v2677_v21 }
  0x98   : > { %v1181_v20 = vadd.f32 %v1149_v28, %v1112_v15  ;;  %v1012_v12 = vmul.f32 %v2741_v45, %v2697_v36  ;;  %v823_v48 = vmul.f32 %v2806_v31, %v2691_v55  ;;  %v525_v26 = vmul.f32 %v2636_v34, %v3107_v51  ;;  %v3112_v28 = vld [vmem:[#allocation22_spill] sm:$0xff] }
  0x99   : > { %v1028_v39 = vadd.f32 %v996_v1, %v923_v53  ;;  %v870_v46 = vadd.f32 %v838_v58, %v801_v18  ;;  %v681_v17 = vadd.f32 %v649_v62, %v611_v2  ;;  %v595_v32 = vmul.f32 %v2615_v38, %v3110_v25  ;;  %v1826_v62 = vld [vmem:[#allocation2 + $0xe0] sm:$0xff] }
  0x9a   : > { %1728 = vmatprep.mubr.f32.mxu1 %v1181_v20  ;;  %v1081_v21 = vmul.f32 %v2784_v8, %v2800_v61  ;;  %v892_v36 = vmul.f32 %v1825_v60, %v2706_v4  ;;  %v665_v31 = vmul.f32 %v2647_v63, %v3112_v28  ;;  %v770_v51 = vmul.f32 %v2682_v11, %v2720_v41  ;;  %v1828_v60 = vld [vmem:[#allocation2 + $0xe1] sm:$0xff] }
  0x9b   : > { %v1097_v37 = vadd.f32 %v1065_v42, %v1028_v39  ;;  %v939_v49 = vadd.f32 %v907_v56, %v870_v46  ;;  %v786_v1 = vadd.f32 %v754_v54, %v681_v17  ;;  %v627_v33 = vadd.f32 %v595_v32, %v525_v26  ;;  %v3113_v46 = vld [vmem:[#allocation23_spill] sm:$0xff] }
  0x9c   : > { %v1150_v25 = vmul.f32 %v2817_v23, %v2894_v52  ;;  %v997_v47 = vmul.f32 %v2741_v45, %v2714_v16  ;;  %v839_v50 = vmul.f32 %v2691_v55, %v2823_v6  ;;  %v510_v58 = vmul.f32 %v2636_v34, %v3108_v44  ;;  %v1827_v44 = vld [vmem:[#allocation2 + $0xda] sm:$0xff] }
  0x9d   : > { %v1166_v24 = vadd.f32 %v1134_v14, %v1097_v37  ;;  %v1044_v10 = vadd.f32 %v1012_v12, %v939_v49  ;;  %v855_v41 = vadd.f32 %v823_v48, %v786_v1  ;;  %v697_v57 = vadd.f32 %v665_v31, %v627_v33  ;;  %v976_v12 = vld [vmem:[#allocation2 + $0x19a] sm:$0xff] }
  0x9e   : > { %v1066_v7 = vmul.f32 %v2831_v19, %v2784_v8  ;;  %v580_v27 = vmul.f32 %v2837_v59, %v2615_v38  ;;  %v650_v16 = vmul.f32 %v1826_v62, %v2647_v63  ;;  %v908_v56 = vmul.f32 %v2706_v4, %v733_v35 }
  0x9f   : > { %1705 = vmatmul.mubr.f32.gmra.mrb[12].mxu0 %v1166_v24  ;;  %v1113_v15 = vadd.f32 %v1081_v21, %v1044_v10  ;;  %v924_v42 = vadd.f32 %v892_v36, %v855_v41  ;;  %v802_v6 = vadd.f32 %v770_v51, %v697_v57  ;;  %v1135_v14 = vmul.f32 %v1827_v44, %v2817_v23 }
  0xa0   : > { %v1013_v53 = vmul.f32 %v2741_v45, %v2736_v0  ;;  %v612_v18 = vadd.f32 %v580_v27, %v510_v58  ;;  %v755_v19 = vmul.f32 %v2682_v11, %v2747_v30  ;;  %v526_v20 = vmul.f32 %v2636_v34, %v3109_v22 }
  0xa1   : > { %v1182_v59 = vadd.f32 %v1150_v25, %v1113_v15  ;;  %v1029_v2 = vadd.f32 %v997_v47, %v924_v42  ;;  %v871_v54 = vadd.f32 %v839_v50, %v802_v6  ;;  %v824_v26 = vmul.f32 %v2861_v43, %v2691_v55  ;;  %v1829_v47 = vld [vmem:[#allocation2 + $0xe2] sm:$0xff] }
  0xa2   : > { %v682_v48 = vadd.f32 %v650_v16, %v612_v18  ;;  %v596_v39 = vmul.f32 %v2615_v38, %v3111_v9  ;;  %v666_v0 = vmul.f32 %v2647_v63, %v3113_v46  ;;  %v1082_v32 = vmul.f32 %v2784_v8, %v2843_v29  ;;  %v734_v9 = vld [vmem:[#allocation2 + $0x1a1] sm:$0xff] }
  0xa3   : > { %1729 = vmatmul.mubr.f32.gmra.mrb[12].mxu1 %v1182_v59  ;;  %v1098_v17 = vadd.f32 %v1066_v7, %v1029_v2  ;;  %v940_v30 = vadd.f32 %v908_v56, %v871_v54  ;;  %v893_v34 = vmul.f32 %v1828_v60, %v2706_v4  ;;  %v771_v43 = vmul.f32 %v2682_v11, %v2767_v40 }
  0xa4   : > { %v787_v21 = vadd.f32 %v755_v19, %v682_v48  ;;  %v628_v22 = vadd.f32 %v596_v39, %v526_v20  ;;  %v1151_v38 = vmul.f32 %v2817_v23, %v976_v12  ;;  %v998_v31 = vmul.f32 %v2741_v45, %v2763_v13 }
  0xa5   : > { %v1167_v36 = vadd.f32 %v1135_v14, %v1098_v17  ;;  %v1045_v28 = vadd.f32 %v1013_v53, %v940_v30  ;;  %v840_v29 = vmul.f32 %v2691_v55, %v2867_v5  ;;  %v1067_v1 = vmul.f32 %v2880_v3, %v2784_v8  ;;  %v977_v55 = vld [vmem:[#allocation2 + $0x1a2] sm:$0xff] }
  0xa6   : > { %v856_v63 = vadd.f32 %v824_v26, %v787_v21  ;;  %v698_v51 = vadd.f32 %v666_v0, %v628_v22  ;;  %v909_v40 = vmul.f32 %v2706_v4, %v734_v9  ;;  %v1136_v35 = vmul.f32 %v1829_v47, %v2817_v23 }
  0xa7   : > { %1707 = vmatprep.mubr.f32.mxu0 %v1167_v36  ;;  %v1114_v37 = vadd.f32 %v1082_v32, %v1045_v28  ;;  %v1014_v50 = vmul.f32 %v2741_v45, %v2800_v61  ;;  %v1083_v3 = vmul.f32 %v2784_v8, %v2894_v52  ;;  %v1152_v4 = vmul.f32 %v2817_v23, %v977_v55  ;;  %v2955_v45 = vld [vmem:[%s3039_s4] ss:$0 sm:$0xff] }
  0xa8   : > { %v925_v49 = vadd.f32 %v893_v34, %v856_v63  ;;  %v803_v11 = vadd.f32 %v771_v43, %v698_v51 }
  0xa9   : > { %v1183_v33 = vadd.f32 %v1151_v38, %v1114_v37 }
  0xaa   : > { %v1030_v25 = vadd.f32 %v998_v31, %v925_v49  ;;  %v872_v13 = vadd.f32 %v840_v29, %v803_v11 }
  0xab   : > { %1731 = vmatprep.mubr.f32.mxu1 %v1183_v33 }
  0xac   : > { %v1099_v5 = vadd.f32 %v1067_v1, %v1030_v25  ;;  %v941_v58 = vadd.f32 %v909_v40, %v872_v13 }
  0xae   : > { %v1168_v24 = vadd.f32 %v1136_v35, %v1099_v5  ;;  %v1046_v10 = vadd.f32 %v1014_v50, %v941_v58 }
  0xb0   : > { %1708 = vmatmul.mubr.f32.gmra.mrb[14].mxu0 %v1168_v24  ;;  %v1115_v41 = vadd.f32 %v1083_v3, %v1046_v10 }
  0xb2   : > { %v1184_v57 = vadd.f32 %v1152_v4, %v1115_v41 }
  0xb4   : > { %1732 = vmatmul.mubr.f32.gmra.mrb[14].mxu1 %v1184_v57 }
 0x10f   : > { %v1688_v8 = vpop.f32.mrb[0].mxu0 }
 0x110   : > { %v1280_v61 = vadd.f32 %v1688_v8, %v2955_v45  ;;  %v1274_v23 = vpop.f32.mrb[1].mxu0 }
 0x111   : > { %v1275_v52 = vadd.f32 %v2955_v45, %v1274_v23 }
 0x112   : > { %1434 = vst [vmem:[%s2960_s16 + $0x8] sm:$0xff] %v1280_v61 }
 0x113   : > { %v1712_v7 = vpop.f32.mrb[0].mxu1  ;;  %1433 = vst [vmem:[%s2960_s16] sm:$0xff] %v1275_v52 }
 0x114   : > { %v1360_v27 = vadd.f32 %v1712_v7, %v2955_v45  ;;  %v1354_v62 = vpop.f32.mrb[1].mxu1 }
 0x115   : > { %v1355_v16 = vadd.f32 %v2955_v45, %v1354_v62 }
 0x116   : > { %1450 = vst [vmem:[%s2960_s16 + $0x88] sm:$0xff] %v1360_v27 }
 0x117   : > { %1449 = vst [vmem:[%s2960_s16 + $0x80] sm:$0xff] %v1355_v16 }
 0x11c   : > { %v1691_v15 = vpop.f32.mrb[2].mxu0 }
 0x11d   : > { %v1290_v42 = vadd.f32 %v1691_v15, %v2955_v45  ;;  %v1284_v6 = vpop.f32.mrb[3].mxu0 }
 0x11e   : > { %v1285_v56 = vadd.f32 %v2955_v45, %v1284_v6 }
 0x11f   : > { %1436 = vst [vmem:[%s2960_s16 + $0x18] sm:$0xff] %v1290_v42 }
 0x120   : > { %1435 = vst [vmem:[%s2960_s16 + $0x10] sm:$0xff] %v1285_v56 }
 0x122   : > { %v1715_v44 = vpop.f32.mrb[2].mxu1 }
 0x123   : > { %v1370_v14 = vadd.f32 %v1715_v44, %v2955_v45  ;;  %v1364_v53 = vpop.f32.mrb[3].mxu1 }
 0x124   : > { %v1365_v18 = vadd.f32 %v2955_v45, %v1364_v53 }
 0x125   : > { %1452 = vst [vmem:[%s2960_s16 + $0x98] sm:$0xff] %v1370_v14 }
 0x126   : > { %1451 = vst [vmem:[%s2960_s16 + $0x90] sm:$0xff] %v1365_v18 }
 0x12d   : > { %v1694_v19 = vpop.f32.mrb[4].mxu0 }
 0x12e   : > { %v1300_v59 = vadd.f32 %v1694_v19, %v2955_v45  ;;  %v1294_v2 = vpop.f32.mrb[5].mxu0 }
 0x12f   : > { %v1295_v54 = vadd.f32 %v2955_v45, %v1294_v2 }
 0x130   : > { %1438 = vst [vmem:[%s2960_s16 + $0x28] sm:$0xff] %v1300_v59 }
 0x131   : > { %v1718_v20 = vpop.f32.mrb[4].mxu1  ;;  %1437 = vst [vmem:[%s2960_s16 + $0x20] sm:$0xff] %v1295_v54 }
 0x132   : > { %v1380_v12 = vadd.f32 %v1718_v20, %v2955_v45  ;;  %v1374_v48 = vpop.f32.mrb[5].mxu1 }
 0x133   : > { %v1375_v26 = vadd.f32 %v2955_v45, %v1374_v48 }
 0x134   : > { %1454 = vst [vmem:[%s2960_s16 + $0xa8] sm:$0xff] %v1380_v12 }
 0x135   : > { %1453 = vst [vmem:[%s2960_s16 + $0xa0] sm:$0xff] %v1375_v26 }
 0x13f   : > { %v1697_v39 = vpop.f32.mrb[6].mxu0 }
 0x140   : > { %v1310_v46 = vadd.f32 %v1697_v39, %v2955_v45  ;;  %v1304_v0 = vpop.f32.mrb[7].mxu0 }
 0x141   : > { %v1305_v17 = vadd.f32 %v2955_v45, %v1304_v0 }
 0x142   : > { %1440 = vst [vmem:[%s2960_s16 + $0x38] sm:$0xff] %v1310_v46 }
 0x143   : > { %v1721_v30 = vpop.f32.mrb[6].mxu1  ;;  %1439 = vst [vmem:[%s2960_s16 + $0x30] sm:$0xff] %v1305_v17 }
 0x144   : > { %v1390_v32 = vadd.f32 %v1721_v30, %v2955_v45  ;;  %v1384_v21 = vpop.f32.mrb[7].mxu1 }
 0x145   : > { %v1385_v60 = vadd.f32 %v2955_v45, %v1384_v21 }
 0x146   : > { %1456 = vst [vmem:[%s2960_s16 + $0xb8] sm:$0xff] %v1390_v32 }
 0x147   : > { %1455 = vst [vmem:[%s2960_s16 + $0xb0] sm:$0xff] %v1385_v60 }
 0x150   : > { %v1700_v34 = vpop.f32.mrb[8].mxu0 }
 0x151   : > { %v1320_v22 = vadd.f32 %v1700_v34, %v2955_v45  ;;  %v1314_v43 = vpop.f32.mrb[9].mxu0 }
 0x152   : > { %v1315_v36 = vadd.f32 %v2955_v45, %v1314_v43 }
 0x153   : > { %1442 = vst [vmem:[%s2960_s16 + $0x48] sm:$0xff] %v1320_v22 }
 0x154   : > { %v1724_v28 = vpop.f32.mrb[8].mxu1  ;;  %1441 = vst [vmem:[%s2960_s16 + $0x40] sm:$0xff] %v1315_v36 }
 0x155   : > { %v1400_v38 = vadd.f32 %v1724_v28, %v2955_v45  ;;  %v1394_v9 = vpop.f32.mrb[9].mxu1 }
 0x156   : > { %v1395_v63 = vadd.f32 %v2955_v45, %v1394_v9 }
 0x157   : > { %1458 = vst [vmem:[%s2960_s16 + $0xc8] sm:$0xff] %v1400_v38 }
 0x158   : > { %1457 = vst [vmem:[%s2960_s16 + $0xc0] sm:$0xff] %v1395_v63 }
 0x161   : > { %v1703_v31 = vpop.f32.mrb[10].mxu0 }
 0x162   : > { %v1330_v51 = vadd.f32 %v1703_v31, %v2955_v45  ;;  %v1324_v29 = vpop.f32.mrb[11].mxu0 }
 0x163   : > { %v1325_v37 = vadd.f32 %v2955_v45, %v1324_v29 }
 0x164   : > { %1444 = vst [vmem:[%s2960_s16 + $0x58] sm:$0xff] %v1330_v51 }
 0x165   : > { %v1727_v49 = vpop.f32.mrb[10].mxu1  ;;  %1443 = vst [vmem:[%s2960_s16 + $0x50] sm:$0xff] %v1325_v37 }
 0x166   : > { %v1410_v1 = vadd.f32 %v1727_v49, %v2955_v45  ;;  %v1404_v11 = vpop.f32.mrb[11].mxu1 }
 0x167   : > { %v1405_v40 = vadd.f32 %v2955_v45, %v1404_v11 }
 0x168   : > { %1460 = vst [vmem:[%s2960_s16 + $0xd8] sm:$0xff] %v1410_v1 }
 0x169   : > { %1459 = vst [vmem:[%s2960_s16 + $0xd0] sm:$0xff] %v1405_v40 }
 0x172   : > { %v1706_v33 = vpop.f32.mrb[12].mxu0 }
 0x173   : > { %v1340_v25 = vadd.f32 %v1706_v33, %v2955_v45  ;;  %v1334_v47 = vpop.f32.mrb[13].mxu0 }
 0x174   : > { %v1335_v35 = vadd.f32 %v2955_v45, %v1334_v47 }
 0x175   : > { %1446 = vst [vmem:[%s2960_s16 + $0x68] sm:$0xff] %v1340_v25 }
 0x176   : > { %v1730_v13 = vpop.f32.mrb[12].mxu1  ;;  %1445 = vst [vmem:[%s2960_s16 + $0x60] sm:$0xff] %v1335_v35 }
 0x177   : > { %v1420_v50 = vadd.f32 %v1730_v13, %v2955_v45  ;;  %v1414_v55 = vpop.f32.mrb[13].mxu1 }
 0x178   : > { %v1415_v5 = vadd.f32 %v2955_v45, %v1414_v55 }
 0x179   : > { %1462 = vst [vmem:[%s2960_s16 + $0xe8] sm:$0xff] %v1420_v50 }
 0x17a   : > { %1461 = vst [vmem:[%s2960_s16 + $0xe0] sm:$0xff] %v1415_v5 }
 0x183   : > { %v1709_v58 = vpop.f32.mrb[14].mxu0 }
 0x184   : > { %v1350_v3 = vadd.f32 %v1709_v58, %v2955_v45  ;;  %v1344_v24 = vpop.f32.mrb[15].mxu0 }
 0x185   : > { %v1345_v10 = vadd.f32 %v2955_v45, %v1344_v24 }
 0x186   : > { %1448 = vst [vmem:[%s2960_s16 + $0x78] sm:$0xff] %v1350_v3 }
 0x187   : > { %v1733_v4 = vpop.f32.mrb[14].mxu1  ;;  %1447 = vst [vmem:[%s2960_s16 + $0x70] sm:$0xff] %v1345_v10 }
 0x188   : > { %v1430_v41 = vadd.f32 %v1733_v4, %v2955_v45  ;;  %v1424_v57 = vpop.f32.mrb[15].mxu1 }
 0x189   : > { %v1425_v8 = vadd.f32 %v2955_v45, %v1424_v57 }
 0x18a   : > { %1464 = vst [vmem:[%s2960_s16 + $0xf8] sm:$0xff] %v1430_v41 }
 0x18b   : > { %1463 = vst [vmem:[%s2960_s16 + $0xf0] sm:$0xff] %v1425_v8 }
 0x18c PF: > { %s15_s20 = sadd.s32 1, %s1852_s20   ;;  %s3114_s18 = smov %s1848_s19 }
 0x18d   : > { %p12_p5 = scmp.ge.s32.totalorder %s15_s20, 4   ;;  %s3115_s19 = smov %s3117_s21 }
 0x18f   :  { %14 = sbr.rel (!%p12_p5) target bundleno = 2 (0x2), region = 76 }

</bundles_post_ra>
